<compile_context>
chip_gen: v6e
topology: v6e:2x2x1
jax: 0.10.0
libtpu: 0.0.40
codegen_flags: <defaults>
</compile_context>

<pallas_src>
import jax
import jax.numpy as jnp
from jax import lax
from jax.experimental import pallas as pl
from jax.experimental.pallas import tpu as pltpu

VMEM_LIMIT = 48 * 1024 * 1024  # < v7x 64 MiB physical, >> default scoped limits on v5e/v6e


def _pick_group(total, rows_per_item, target_rows=512):
    """Largest divisor of `total` whose block holds <= ~target_rows matmul rows."""
    g = max(1, min(total, max(1, target_rows // max(rows_per_item, 1))))
    while total % g:
        g -= 1
    return g


# -------------------- kernel 1: 1x1 conv (no bias) + ReLU + global avg pool --------------------
def _conv_pool_kernel(x_ref, w_ref, o_ref):
    # x_ref: (G, P, C) bf16, w_ref: (C, C) bf16, o_ref: (G, C) f32
    G, P, C = x_ref.shape
    x2 = x_ref[...].reshape(G * P, C)                                       # pack G frames -> one matmul
    y = jnp.maximum(jnp.dot(x2, w_ref[...],
                            preferred_element_type=jnp.float32), 0.0)       # (G*P, C) f32
    o_ref[...] = jnp.mean(y.reshape(G, P, C), axis=1)                       # per-frame spatial mean


def conv1x1_relu_avgpool(x_cl_bf16, w1_t_bf16):
    BT, P, C = x_cl_bf16.shape
    G = _pick_group(BT, P)                                                  # >=256-ish MXU rows per step
    return pl.pallas_call(
        _conv_pool_kernel,
        out_shape=jax.ShapeDtypeStruct((BT, C), jnp.float32),
        grid=(BT // G,),
        in_specs=[pl.BlockSpec((G, P, C), lambda i: (i, 0, 0)),
                  pl.BlockSpec((C, C), lambda i: (0, 0))],                  # W1 resident
        out_specs=pl.BlockSpec((G, C), lambda i: (i, 0)),                   # lane-dense, no post-slice
        compiler_params=pltpu.CompilerParams(
            dimension_semantics=("parallel",), vmem_limit_bytes=VMEM_LIMIT),
    )(x_cl_bf16, w1_t_bf16)


# -------------------- kernel 2: hoisted LSTM input projection x @ Wih^T + (bih+bhh) ------------
def _gate_proj_kernel(f_ref, w_ref, b_ref, o_ref):
    # f_ref: (tm, C) f32, w_ref: (C, 4H) bf16, b_ref: (1, 4H) f32, o_ref: (tm, 4H) f32
    o_ref[...] = (jnp.dot(f_ref[...].astype(jnp.bfloat16), w_ref[...],
                          preferred_element_type=jnp.float32) + b_ref[...])


def lstm_input_projection(feat, wih_t_bf16, bias_row):
    BT, C = feat.shape
    G4 = wih_t_bf16.shape[1]
    tm = _pick_group(BT, 1, target_rows=256)
    return pl.pallas_call(
        _gate_proj_kernel,
        out_shape=jax.ShapeDtypeStruct((BT, G4), jnp.float32),
        grid=(BT // tm,),
        in_specs=[pl.BlockSpec((tm, C), lambda i: (i, 0)),
                  pl.BlockSpec((C, G4), lambda i: (0, 0)),                  # Wih resident (bf16)
                  pl.BlockSpec((1, G4), lambda i: (0, 0))],
        out_specs=pl.BlockSpec((tm, G4), lambda i: (i, 0)),
        compiler_params=pltpu.CompilerParams(
            dimension_semantics=("parallel",), vmem_limit_bytes=VMEM_LIMIT),
    )(feat, wih_t_bf16, bias_row)


# -------------------- kernel 3: LSTM recurrence (Whh only) + fused residual add ----------------
def _lstm_kernel(gx_ref, f_ref, whh_ref, o_ref, h_scr, c_scr):
    k = pl.program_id(0)

    @pl.when(k == 0)
    def _():
        h_scr[...] = jnp.zeros_like(h_scr)
        c_scr[...] = jnp.zeros_like(c_scr)

    H = h_scr.shape[-1]
    gates = gx_ref[0] + jnp.dot(h_scr[...].astype(jnp.bfloat16), whh_ref[...],
                                preferred_element_type=jnp.float32)          # (B, 4H) f32
    i_g = jax.nn.sigmoid(gates[:, 0:H])
    f_g = jax.nn.sigmoid(gates[:, H:2 * H])
    g_g = jnp.tanh(gates[:, 2 * H:3 * H])
    o_g = jax.nn.sigmoid(gates[:, 3 * H:4 * H])
    c_new = f_g * c_scr[...] + i_g * g_g
    h_new = o_g * jnp.tanh(c_new)
    c_scr[...] = c_new
    h_scr[...] = h_new
    o_ref[0] = f_ref[0] + h_new                                              # temp_f = feat + h_t


def lstm_residual_forward(gx_seq, feat_seq, whh_t_bf16):
    T_, B_, G4 = gx_seq.shape
    H_ = whh_t_bf16.shape[0]
    # TODO(synk): could emit (B, T, H) directly, but size-1 blocks on a non-leading second-minor
    # axis risk the (8,128) block rule; keep safe (T, B, H) blocks and transpose in the wrapper.
    return pl.pallas_call(
        _lstm_kernel,
        out_shape=jax.ShapeDtypeStruct((T_, B_, H_), jnp.float32),
        grid=(T_,),
        in_specs=[pl.BlockSpec((1, B_, G4), lambda k: (k, 0, 0)),
                  pl.BlockSpec((1, B_, H_), lambda k: (k, 0, 0)),
                  pl.BlockSpec((H_, G4), lambda k: (0, 0))],                 # Whh resident (bf16)
        out_specs=pl.BlockSpec((1, B_, H_), lambda k: (k, 0, 0)),
        scratch_shapes=[pltpu.VMEM((B_, H_), jnp.float32),
                        pltpu.VMEM((B_, H_), jnp.float32)],
        compiler_params=pltpu.CompilerParams(
            dimension_semantics=("arbitrary",), vmem_limit_bytes=VMEM_LIMIT),
    )(gx_seq, feat_seq, whh_t_bf16)


# -------------------- kernel 4: all attention heads fused, lane-dense logits slab --------------
def _heads_kernel(f_ref, wa_ref, ba_ref, wt_ref, bt_ref, wc_ref, bc_ref, msk_ref, o_ref):
    # f_ref: (Gb, T, F) f32   wa_ref: (F, nH*M) bf16   ba_ref: (1, nH*M) f32
    # wt_ref: (nH*M, 3*nH) bf16   bt_ref: (1, nH) f32
    # wc_ref: (F, Lpad) bf16   bc_ref: (1, Lpad) f32   msk_ref: (nH, Lpad) f32
    # o_ref: (Gb, Lpad) f32
    Gb, T, F = f_ref.shape
    nH = wt_ref.shape[1] // 3

    x = f_ref[...]                                                           # f32 copy for weighted sum
    x2 = x.reshape(Gb * T, F)
    A2 = jnp.maximum(
        jnp.dot(x2.astype(jnp.bfloat16), wa_ref[...],
                preferred_element_type=jnp.float32) + ba_ref[...], 0.0)      # (Gb*T, nH*M)
    taps = jnp.dot(A2.astype(jnp.bfloat16), wt_ref[...],
                   preferred_element_type=jnp.float32).reshape(Gb, T, 3 * nH)

    rows = []
    for b in range(Gb):                                                      # static unroll (small B)
        tb = taps[b]                                                         # (T, 3*nH)
        t0 = tb[:, 0:nH]
        t1 = tb[:, nH:2 * nH]
        t2 = tb[:, 2 * nH:3 * nH]
        z = jnp.zeros((1, nH), jnp.float32)
        a = (jnp.concatenate([z, t0[:-1]], axis=0)          # A[t-1] tap
             + t1                                           # A[t]   tap
             + jnp.concatenate([t2[1:], z], axis=0)         # A[t+1] tap
             + bt_ref[...])                                  # (T, nH)
        a = jnp.maximum(a, 0.0)
        a = a - jnp.max(a, axis=0, keepdims=True)
        e = jnp.exp(a)
        attn = e / jnp.sum(e, axis=0, keepdims=True)        # softmax over T, f32
        xb = x[b]                                           # (T, F)
        feats = lax.dot_general(attn, xb, (((0,), (0,)), ((), ())),
                                preferred_element_type=jnp.float32)          # (nH, F)
        lg = jnp.dot(feats.astype(jnp.bfloat16), wc_ref[...],
                     preferred_element_type=jnp.float32)                     # (nH, Lpad)
        row = jnp.sum(lg * msk_ref[...], axis=0, keepdims=True) + bc_ref[...]
        rows.append(row)
    o_ref[...] = jnp.concatenate(rows, axis=0)                               # one lane-dense store


def fused_attn_heads(temp_f, pk):
    B_, T_, F_ = temp_f.shape
    nHM = pk["Wa"].shape[1]
    nH = pk["bt"].shape[1]
    Lpad = pk["Wc"].shape[1]
    Gb = _pick_group(B_, 1, target_rows=8)
    return pl.pallas_call(
        _heads_kernel,
        out_shape=jax.ShapeDtypeStruct((B_, Lpad), jnp.float32),
        grid=(B_ // Gb,),
        in_specs=[pl.BlockSpec((Gb, T_, F_), lambda i: (i, 0, 0)),
                  pl.BlockSpec((F_, nHM), lambda i: (0, 0)),
                  pl.BlockSpec((1, nHM), lambda i: (0, 0)),
                  pl.BlockSpec((nHM, 3 * nH), lambda i: (0, 0)),
                  pl.BlockSpec((1, nH), lambda i: (0, 0)),
                  pl.BlockSpec((F_, Lpad), lambda i: (0, 0)),
                  pl.BlockSpec((1, Lpad), lambda i: (0, 0)),
                  pl.BlockSpec((nH, Lpad), lambda i: (0, 0))],
        out_specs=pl.BlockSpec((Gb, Lpad), lambda i: (i, 0)),
        compiler_params=pltpu.CompilerParams(
            dimension_semantics=("parallel",), vmem_limit_bytes=VMEM_LIMIT),
    )(temp_f, pk["Wa"], pk["ba"], pk["Wt"], pk["bt"], pk["Wc"], pk["bc"], pk["mask"])


# -------------------- head parameter packing (done once, hoisted by jit) -----------------------
def _pack_heads(heads, feature_dim):
    nH = len(heads)
    M = heads[0]["Wa"].shape[0]
    lens = [int(h["Wc"].shape[0]) for h in heads]
    total = sum(lens)
    Lpad = ((total + 127) // 128) * 128                     # lane-dense logits slab width

    WaCat = jnp.concatenate([h["Wa"].T for h in heads], axis=1).astype(jnp.bfloat16)   # (F, nH*M)
    baCat = jnp.concatenate([h["ba"] for h in heads]).reshape(1, nH * M)

    WtCat = jnp.zeros((nH * M, 3 * nH), jnp.float32)        # block structure: head h uses col k*nH+h
    btRow = jnp.zeros((1, nH), jnp.float32)
    for hdx, hd in enumerate(heads):
        for k in range(3):
            WtCat = WtCat.at[hdx * M:(hdx + 1) * M, k * nH + hdx].set(hd["Wt"][:, k])
        btRow = btRow.at[0, hdx].set(hd["bt"][0])

    WcCat = jnp.zeros((feature_dim, Lpad), jnp.float32)
    bcCat = jnp.zeros((1, Lpad), jnp.float32)
    mask = jnp.zeros((nH, Lpad), jnp.float32)
    offs, off = [], 0
    for hdx, (hd, L) in enumerate(zip(heads, lens)):
        WcCat = WcCat.at[:, off:off + L].set(hd["Wc"].T)
        bcCat = bcCat.at[0, off:off + L].set(hd["bc"])
        mask = mask.at[hdx, off:off + L].set(1.0)
        offs.append(off)
        off += L
    return dict(Wa=WaCat, ba=baCat, Wt=WtCat.astype(jnp.bfloat16), bt=btRow,
                Wc=WcCat.astype(jnp.bfloat16), bc=bcCat, mask=mask,
                offs=offs, lens=lens)


# -------------------- full forward (Pallas) --------------------
def forward_pallas(x, p):
    b, t, c, w, h = x.shape
    H = p["Whh"].shape[1]
    assert H == c, "module requires feature_dim == hidden_dim for the residual add"

    # NCHW -> channels-last, flatten spatial; bf16 activations for the MXU path.
    x_cl = jnp.transpose(x, (0, 1, 3, 4, 2)).reshape(b * t, w * h, c).astype(jnp.bfloat16)
    feat = conv1x1_relu_avgpool(x_cl, p["W1"].T.astype(jnp.bfloat16))        # (BT, C) f32

    # Hoisted input projection (fully parallel matmul), biases folded in.
    bias_row = (p["bih"] + p["bhh"]).reshape(1, -1)
    gx = lstm_input_projection(feat, p["Wih"].T.astype(jnp.bfloat16), bias_row)  # (BT, 4H)

    # Recurrence over T with only Whh resident; residual add fused in-kernel.
    feat_seq = jnp.transpose(feat.reshape(b, t, c), (1, 0, 2))               # (T, B, C)
    gx_seq = jnp.transpose(gx.reshape(b, t, 4 * H), (1, 0, 2))               # (T, B, 4H)
    temp_f_seq = lstm_residual_forward(gx_seq, feat_seq, p["Whh"].T.astype(jnp.bfloat16))
    temp_f = jnp.transpose(temp_f_seq, (1, 0, 2))                            # (B, T, C)

    # All classifier heads fused into one kernel; split the lane-dense slab per head.
    pk = _pack_heads(p["heads"], c)
    slab = fused_attn_heads(temp_f, pk)                                      # (B, Lpad)
    return [slab[:, off:off + L] for off, L in zip(pk["offs"], pk["lens"])]


# -------------------- pure-JAX reference (mirrors the PyTorch forward, f32) --------------------
def forward_reference(x, p):
    b, t, c, w, h = x.shape
    xf = x.reshape(b * t, c, w * h)
    y = jnp.maximum(jnp.einsum("oc,ncp->nop", p["W1"], xf), 0.0)
    feat = y.mean(axis=2).reshape(b, t, c)

    H = p["Whh"].shape[1]

    def step(carry, x_t):
        h_prev, c_prev = carry
        g = x_t @ p["Wih"].T + h_prev @ p["Whh"].T + p["bih"] + p["bhh"]
        i = jax.nn.sigmoid(g[:, :H])
        f = jax.nn.sigmoid(g[:, H:2 * H])
        gg = jnp.tanh(g[:, 2 * H:3 * H])
        o = jax.nn.sigmoid(g[:, 3 * H:])
        c_new = f * c_prev + i * gg
        h_new = o * jnp.tanh(c_new)
        return (h_new, c_new), h_new

    init = (jnp.zeros((b, H), jnp.float32), jnp.zeros((b, H), jnp.float32))
    _, hs = jax.lax.scan(step, init, jnp.transpose(feat, (1, 0, 2)))
    temp_f = feat + jnp.transpose(hs, (1, 0, 2))

    outs = []
    for hp in p["heads"]:
        A = jnp.maximum(jnp.einsum("btf,mf->btm", temp_f, hp["Wa"]) + hp["ba"], 0.0)
        Ap = jnp.pad(A, ((0, 0), (1, 1), (0, 0)))
        a = hp["bt"][0] + sum(
            jnp.einsum("btm,m->bt", Ap[:, k:k + t, :], hp["Wt"][:, k]) for k in range(3))
        a = jnp.maximum(a, 0.0)
        attn = jax.nn.softmax(a, axis=1)
        f_ = jnp.sum(attn[:, :, None] * temp_f, axis=1)
        outs.append(f_ @ hp["Wc"].T + hp["bc"])
    return outs


# -------------------- deterministic parameter init --------------------
def init_params(key, feature_dim, hidden_dim, attr_lens, middle_dim=256):
    keys = iter(jax.random.split(key, 8 + 6 * len(attr_lens)))
    p = {
        "W1": jax.random.normal(next(keys), (feature_dim, feature_dim), jnp.float32) * 0.1,
        "Wih": jax.random.normal(next(keys), (4 * hidden_dim, feature_dim), jnp.float32) * 0.1,
        "Whh": jax.random.normal(next(keys), (4 * hidden_dim, hidden_dim), jnp.float32) * 0.1,
        "bih": jax.random.normal(next(keys), (4 * hidden_dim,), jnp.float32) * 0.1,
        "bhh": jax.random.normal(next(keys), (4 * hidden_dim,), jnp.float32) * 0.1,
        "heads": [],
    }
    for L in attr_lens:
        p["heads"].append({
            "Wa": jax.random.normal(next(keys), (middle_dim, feature_dim), jnp.float32) * 0.05,
            "ba": jax.random.normal(next(keys), (middle_dim,), jnp.float32) * 0.05,
            "Wt": jax.random.normal(next(keys), (middle_dim, 3), jnp.float32) * 0.05,
            "bt": jax.random.normal(next(keys), (1,), jnp.float32) * 0.05,
            "Wc": jax.random.normal(next(keys), (L, feature_dim), jnp.float32) * 0.05,
            "bc": jax.random.normal(next(keys), (L,), jnp.float32) * 0.05,
        })
    return p


if __name__ == "__main__":
    B, T, C, SW, SH = 2, 4, 32, 8, 8
    HIDDEN = C          # module hard-codes hidden_dim == feature_dim (2048) for the residual add
    ATTR_LENS = [5, 7, 3]

    key = jax.random.PRNGKey(0)
    k_param, k_x = jax.random.split(key)
    params = init_params(k_param, C, HIDDEN, ATTR_LENS)
    x = jax.random.normal(k_x, (B, T, C, SW, SH), jnp.float32)

    fwd = jax.jit(forward_pallas)
    outs = fwd(x, params)
    outs = [jax.block_until_ready(o) for o in outs]

    refs = forward_reference(x, params)
    ok = True
    for o, r in zip(outs, refs):
        # bf16 matmul operands (f32 accumulation) -> loosened tolerance vs f32 reference
        if o.shape != r.shape or not bool(jnp.allclose(o, r, rtol=2e-2, atol=2e-2)):
            ok = False
    if not ok:
        raise SystemExit("MISMATCH vs pure-JAX reference")
    print("KERNEL_OK")
</pallas_src>

<mosaic_0001>
module attributes {stable_mosaic.version = 11 : i64} {
  func.func @_conv_pool_kernel(%arg0: i32, %arg1: memref<8x64x32xbf16, #tpu.memory_space<vmem>>, %arg2: memref<32x32xbf16, #tpu.memory_space<vmem>>, %arg3: memref<8x32xf32, #tpu.memory_space<vmem>>) attributes {dimension_semantics = [#tpu.dimension_semantics<parallel>], iteration_bounds = array<i64: 1>, scalar_prefetch = 0 : i64, scratch_operands = 0 : i64, tpu.core_type = #tpu.core_type<tc>, window_params = [{transform_indices = @transform_0, window_bounds = array<i64: 8, 64, 32>}, {pipeline_mode = #tpu.pipeline_mode<synchronous>, transform_indices = @transform_1, window_bounds = array<i64: 32, 32>}, {transform_indices = @transform_2, window_bounds = array<i64: 8, 32>}]} {
    %c0 = arith.constant 0 : index
    %c0_0 = arith.constant 0 : index
    %c0_1 = arith.constant 0 : index
    %0 = vector.load %arg1[%c0, %c0_0, %c0_1] : memref<8x64x32xbf16, #tpu.memory_space<vmem>>, vector<8x64x32xbf16>
    %1 = vector.shape_cast %0 : vector<8x64x32xbf16> to vector<512x32xbf16>
    %c0_2 = arith.constant 0 : index
    %c0_3 = arith.constant 0 : index
    %2 = vector.load %arg2[%c0_2, %c0_3] : memref<32x32xbf16, #tpu.memory_space<vmem>>, vector<32x32xbf16>
    %cst = arith.constant dense<0.000000e+00> : vector<512x32xf32>
    %3 = tpu.matmul %1, %2, %cst {dimension_numbers = #tpu.dot_dimension_numbers<[1], [0], [0], [1], [0, 0, 1, 1], [], []>} : vector<512x32xbf16>, vector<32x32xbf16>, vector<512x32xf32> -> vector<512x32xf32>
    %cst_4 = arith.constant 0.000000e+00 : f32
    %4 = vector.broadcast %cst_4 : f32 to vector<512x32xf32>
    %5 = arith.maximumf %3, %4 : vector<512x32xf32>
    %6 = vector.shape_cast %5 : vector<512x32xf32> to vector<8x64x32xf32>
    %cst_5 = arith.constant dense<0.000000e+00> : vector<8x32xf32>
    %7 = vector.multi_reduction <add>, %6, %cst_5 [1] : vector<8x64x32xf32> to vector<8x32xf32>
    %cst_6 = arith.constant 6.400000e+01 : f32
    %8 = vector.broadcast %cst_6 : f32 to vector<8x32xf32>
    %9 = arith.divf %7, %8 : vector<8x32xf32>
    %c0_7 = arith.constant 0 : index
    %c0_8 = arith.constant 0 : index
    %10 = vector.load %arg3[%c0_7, %c0_8] : memref<8x32xf32, #tpu.memory_space<vmem>>, vector<8x32xf32>
    tpu.vector_store %arg3[%c0_7, %c0_8], %9 {strides = array<i32>} : memref<8x32xf32, #tpu.memory_space<vmem>>, vector<8x32xf32>,
    return
  }
  func.func @transform_0(%arg0: i32) -> (i32, i32, i32) {
    %c0_i32 = arith.constant 0 : i32
    %c0_i32_0 = arith.constant 0 : i32
    %c0_i32_1 = arith.constant 0 : i32
    return %arg0, %c0_i32, %c0_i32_0 : i32, i32, i32
  }
  func.func @transform_1(%arg0: i32) -> (i32, i32) {
    %c0_i32 = arith.constant 0 : i32
    %c0_i32_0 = arith.constant 0 : i32
    %c0_i32_1 = arith.constant 0 : i32
    return %c0_i32, %c0_i32_0 : i32, i32
  }
  func.func @transform_2(%arg0: i32) -> (i32, i32) {
    %c0_i32 = arith.constant 0 : i32
    %c0_i32_0 = arith.constant 0 : i32
    return %arg0, %c0_i32 : i32, i32
  }
}

module attributes {stable_mosaic.version = 11 : i64} {
  func.func @_gate_proj_kernel(%arg0: i32, %arg1: memref<8x32xf32, #tpu.memory_space<vmem>>, %arg2: memref<32x128xbf16, #tpu.memory_space<vmem>>, %arg3: memref<1x128xf32, #tpu.memory_space<vmem>>, %arg4: memref<8x128xf32, #tpu.memory_space<vmem>>) attributes {dimension_semantics = [#tpu.dimension_semantics<parallel>], iteration_bounds = array<i64: 1>, scalar_prefetch = 0 : i64, scratch_operands = 0 : i64, tpu.core_type = #tpu.core_type<tc>, window_params = [{transform_indices = @transform_0, window_bounds = array<i64: 8, 32>}, {pipeline_mode = #tpu.pipeline_mode<synchronous>, transform_indices = @transform_1, window_bounds = array<i64: 32, 128>}, {pipeline_mode = #tpu.pipeline_mode<synchronous>, transform_indices = @transform_2, window_bounds = array<i64: 1, 128>}, {transform_indices = @transform_3, window_bounds = array<i64: 8, 128>}]} {
    %c0 = arith.constant 0 : index
    %c0_0 = arith.constant 0 : index
    %0 = vector.load %arg1[%c0, %c0_0] : memref<8x32xf32, #tpu.memory_space<vmem>>, vector<8x32xf32>
    %1 = arith.truncf %0 : vector<8x32xf32> to vector<8x32xbf16>
    %c0_1 = arith.constant 0 : index
    %c0_2 = arith.constant 0 : index
    %2 = vector.load %arg2[%c0_1, %c0_2] : memref<32x128xbf16, #tpu.memory_space<vmem>>, vector<32x128xbf16>
    %cst = arith.constant dense<0.000000e+00> : vector<8x128xf32>
    %3 = tpu.matmul %1, %2, %cst {dimension_numbers = #tpu.dot_dimension_numbers<[1], [0], [0], [1], [0, 0, 1, 1], [], []>} : vector<8x32xbf16>, vector<32x128xbf16>, vector<8x128xf32> -> vector<8x128xf32>
    %c0_3 = arith.constant 0 : index
    %c0_4 = arith.constant 0 : index
    %4 = vector.load %arg3[%c0_3, %c0_4] : memref<1x128xf32, #tpu.memory_space<vmem>>, vector<1x128xf32>
    %5 = vector.broadcast %4 : vector<1x128xf32> to vector<8x128xf32>
    %6 = arith.addf %3, %5 : vector<8x128xf32>
    %c0_5 = arith.constant 0 : index
    %c0_6 = arith.constant 0 : index
    %7 = vector.load %arg4[%c0_5, %c0_6] : memref<8x128xf32, #tpu.memory_space<vmem>>, vector<8x128xf32>
    tpu.vector_store %arg4[%c0_5, %c0_6], %6 {strides = array<i32>} : memref<8x128xf32, #tpu.memory_space<vmem>>, vector<8x128xf32>,
    return
  }
  func.func @transform_0(%arg0: i32) -> (i32, i32) {
    %c0_i32 = arith.constant 0 : i32
    %c0_i32_0 = arith.constant 0 : i32
    return %arg0, %c0_i32 : i32, i32
  }
  func.func @transform_1(%arg0: i32) -> (i32, i32) {
    %c0_i32 = arith.constant 0 : i32
    %c0_i32_0 = arith.constant 0 : i32
    %c0_i32_1 = arith.constant 0 : i32
    return %c0_i32, %c0_i32_0 : i32, i32
  }
  func.func @transform_2(%arg0: i32) -> (i32, i32) {
    %c0_i32 = arith.constant 0 : i32
    %c0_i32_0 = arith.constant 0 : i32
    %c0_i32_1 = arith.constant 0 : i32
    return %c0_i32, %c0_i32_0 : i32, i32
  }
  func.func @transform_3(%arg0: i32) -> (i32, i32) {
    %c0_i32 = arith.constant 0 : i32
    %c0_i32_0 = arith.constant 0 : i32
    return %arg0, %c0_i32 : i32, i32
  }
}

module attributes {stable_mosaic.version = 11 : i64} {
  func.func @_lstm_kernel(%arg0: i32, %arg1: memref<1x2x128xf32, #tpu.memory_space<vmem>>, %arg2: memref<1x2x32xf32, #tpu.memory_space<vmem>>, %arg3: memref<32x128xbf16, #tpu.memory_space<vmem>>, %arg4: memref<1x2x32xf32, #tpu.memory_space<vmem>>, %arg5: memref<2x32xf32, #tpu.memory_space<vmem>>, %arg6: memref<2x32xf32, #tpu.memory_space<vmem>>) attributes {dimension_semantics = [#tpu.dimension_semantics<arbitrary>], iteration_bounds = array<i64: 4>, scalar_prefetch = 0 : i64, scratch_operands = 2 : i64, tpu.core_type = #tpu.core_type<tc>, window_params = [{transform_indices = @transform_0, window_bounds = array<i64: 1, 2, 128>}, {transform_indices = @transform_1, window_bounds = array<i64: 1, 2, 32>}, {pipeline_mode = #tpu.pipeline_mode<synchronous>, transform_indices = @transform_2, window_bounds = array<i64: 32, 128>}, {transform_indices = @transform_3, window_bounds = array<i64: 1, 2, 32>}]} {
    %c0_i32 = arith.constant 0 : i32
    %0 = arith.cmpi eq, %arg0, %c0_i32 : i32
    %1 = arith.extui %0 : i1 to i32
    %c0_i32_0 = arith.constant 0 : i32
    %2 = arith.cmpi ne, %1, %c0_i32_0 : i32
    scf.if %2 {
      %cst_22 = arith.constant 0.000000e+00 : f32
      %44 = vector.broadcast %cst_22 : f32 to vector<2x32xf32>
      %c0_23 = arith.constant 0 : index
      %c0_24 = arith.constant 0 : index
      %45 = vector.load %arg5[%c0_23, %c0_24] : memref<2x32xf32, #tpu.memory_space<vmem>>, vector<2x32xf32>
      tpu.vector_store %arg5[%c0_23, %c0_24], %44 {strides = array<i32>} : memref<2x32xf32, #tpu.memory_space<vmem>>, vector<2x32xf32>,
      %cst_25 = arith.constant 0.000000e+00 : f32
      %46 = vector.broadcast %cst_25 : f32 to vector<2x32xf32>
      %c0_26 = arith.constant 0 : index
      %c0_27 = arith.constant 0 : index
      %47 = vector.load %arg6[%c0_26, %c0_27] : memref<2x32xf32, #tpu.memory_space<vmem>>, vector<2x32xf32>
      tpu.vector_store %arg6[%c0_26, %c0_27], %46 {strides = array<i32>} : memref<2x32xf32, #tpu.memory_space<vmem>>, vector<2x32xf32>,
    } else {
    }
    %c0 = arith.constant 0 : index
    %c0_1 = arith.constant 0 : index
    %c0_2 = arith.constant 0 : index
    %3 = vector.load %arg1[%c0, %c0_1, %c0_2] : memref<1x2x128xf32, #tpu.memory_space<vmem>>, vector<1x2x128xf32>
    %4 = vector.shape_cast %3 : vector<1x2x128xf32> to vector<2x128xf32>
    %c0_3 = arith.constant 0 : index
    %c0_4 = arith.constant 0 : index
    %5 = vector.load %arg5[%c0_3, %c0_4] : memref<2x32xf32, #tpu.memory_space<vmem>>, vector<2x32xf32>
    %6 = arith.truncf %5 : vector<2x32xf32> to vector<2x32xbf16>
    %c0_5 = arith.constant 0 : index
    %c0_6 = arith.constant 0 : index
    %7 = vector.load %arg3[%c0_5, %c0_6] : memref<32x128xbf16, #tpu.memory_space<vmem>>, vector<32x128xbf16>
    %cst = arith.constant dense<0.000000e+00> : vector<2x128xf32>
    %8 = tpu.matmul %6, %7, %cst {dimension_numbers = #tpu.dot_dimension_numbers<[1], [0], [0], [1], [0, 0, 1, 1], [], []>} : vector<2x32xbf16>, vector<32x128xbf16>, vector<2x128xf32> -> vector<2x128xf32>
    %9 = arith.addf %4, %8 : vector<2x128xf32>
    %10 = vector.extract_strided_slice %9 {offsets = [0, 0], sizes = [2, 32], strides = [1, 1]} : vector<2x128xf32> to vector<2x32xf32>
    %11 = arith.negf %10 : vector<2x32xf32>
    %12 = math.exp %11 : vector<2x32xf32>
    %cst_7 = arith.constant 1.000000e+00 : f32
    %13 = vector.broadcast %cst_7 : f32 to vector<2x32xf32>
    %14 = arith.addf %13, %12 : vector<2x32xf32>
    %15 = arith.divf %13, %14 : vector<2x32xf32>
    %16 = vector.extract_strided_slice %9 {offsets = [0, 32], sizes = [2, 32], strides = [1, 1]} : vector<2x128xf32> to vector<2x32xf32>
    %17 = arith.negf %16 : vector<2x32xf32>
    %18 = math.exp %17 : vector<2x32xf32>
    %cst_8 = arith.constant 1.000000e+00 : f32
    %19 = vector.broadcast %cst_8 : f32 to vector<2x32xf32>
    %20 = arith.addf %19, %18 : vector<2x32xf32>
    %21 = arith.divf %19, %20 : vector<2x32xf32>
    %22 = vector.extract_strided_slice %9 {offsets = [0, 64], sizes = [2, 32], strides = [1, 1]} : vector<2x128xf32> to vector<2x32xf32>
    %23 = math.tanh %22 : vector<2x32xf32>
    %24 = vector.extract_strided_slice %9 {offsets = [0, 96], sizes = [2, 32], strides = [1, 1]} : vector<2x128xf32> to vector<2x32xf32>
    %25 = arith.negf %24 : vector<2x32xf32>
    %26 = math.exp %25 : vector<2x32xf32>
    %cst_9 = arith.constant 1.000000e+00 : f32
    %27 = vector.broadcast %cst_9 : f32 to vector<2x32xf32>
    %28 = arith.addf %27, %26 : vector<2x32xf32>
    %29 = arith.divf %27, %28 : vector<2x32xf32>
    %c0_10 = arith.constant 0 : index
    %c0_11 = arith.constant 0 : index
    %30 = vector.load %arg6[%c0_10, %c0_11] : memref<2x32xf32, #tpu.memory_space<vmem>>, vector<2x32xf32>
    %31 = arith.mulf %21, %30 : vector<2x32xf32>
    %32 = arith.mulf %15, %23 : vector<2x32xf32>
    %33 = arith.addf %31, %32 : vector<2x32xf32>
    %34 = math.tanh %33 : vector<2x32xf32>
    %35 = arith.mulf %29, %34 : vector<2x32xf32>
    %c0_12 = arith.constant 0 : index
    %c0_13 = arith.constant 0 : index
    %36 = vector.load %arg6[%c0_12, %c0_13] : memref<2x32xf32, #tpu.memory_space<vmem>>, vector<2x32xf32>
    tpu.vector_store %arg6[%c0_12, %c0_13], %33 {strides = array<i32>} : memref<2x32xf32, #tpu.memory_space<vmem>>, vector<2x32xf32>,
    %c0_14 = arith.constant 0 : index
    %c0_15 = arith.constant 0 : index
    %37 = vector.load %arg5[%c0_14, %c0_15] : memref<2x32xf32, #tpu.memory_space<vmem>>, vector<2x32xf32>
    tpu.vector_store %arg5[%c0_14, %c0_15], %35 {strides = array<i32>} : memref<2x32xf32, #tpu.memory_space<vmem>>, vector<2x32xf32>,
    %c0_16 = arith.constant 0 : index
    %c0_17 = arith.constant 0 : index
    %c0_18 = arith.constant 0 : index
    %38 = vector.load %arg2[%c0_16, %c0_17, %c0_18] : memref<1x2x32xf32, #tpu.memory_space<vmem>>, vector<1x2x32xf32>
    %39 = vector.shape_cast %38 : vector<1x2x32xf32> to vector<2x32xf32>
    %40 = arith.addf %39, %35 : vector<2x32xf32>
    %c0_19 = arith.constant 0 : index
    %c0_20 = arith.constant 0 : index
    %c0_21 = arith.constant 0 : index
    %41 = vector.load %arg4[%c0_19, %c0_20, %c0_21] : memref<1x2x32xf32, #tpu.memory_space<vmem>>, vector<1x2x32xf32>
    %42 = vector.shape_cast %41 : vector<1x2x32xf32> to vector<2x32xf32>
    %43 = vector.shape_cast %40 : vector<2x32xf32> to vector<1x2x32xf32>
    tpu.vector_store %arg4[%c0_19, %c0_20, %c0_21], %43 {strides = array<i32>} : memref<1x2x32xf32, #tpu.memory_space<vmem>>, vector<1x2x32xf32>,
    return
  }
  func.func @transform_0(%arg0: i32) -> (i32, i32, i32) {
    %c0_i32 = arith.constant 0 : i32
    %c0_i32_0 = arith.constant 0 : i32
    %c0_i32_1 = arith.constant 0 : i32
    return %arg0, %c0_i32, %c0_i32_0 : i32, i32, i32
  }
  func.func @transform_1(%arg0: i32) -> (i32, i32, i32) {
    %c0_i32 = arith.constant 0 : i32
    %c0_i32_0 = arith.constant 0 : i32
    %c0_i32_1 = arith.constant 0 : i32
    return %arg0, %c0_i32, %c0_i32_0 : i32, i32, i32
  }
  func.func @transform_2(%arg0: i32) -> (i32, i32) {
    %c0_i32 = arith.constant 0 : i32
    %c0_i32_0 = arith.constant 0 : i32
    %c0_i32_1 = arith.constant 0 : i32
    return %c0_i32, %c0_i32_0 : i32, i32
  }
  func.func @transform_3(%arg0: i32) -> (i32, i32, i32) {
    %c0_i32 = arith.constant 0 : i32
    %c0_i32_0 = arith.constant 0 : i32
    %c0_i32_1 = arith.constant 0 : i32
    return %arg0, %c0_i32, %c0_i32_0 : i32, i32, i32
  }
}

module attributes {stable_mosaic.version = 11 : i64} {
  func.func @_heads_kernel(%arg0: i32, %arg1: memref<2x4x32xf32, #tpu.memory_space<vmem>>, %arg2: memref<32x768xbf16, #tpu.memory_space<vmem>>, %arg3: memref<1x768xf32, #tpu.memory_space<vmem>>, %arg4: memref<768x9xbf16, #tpu.memory_space<vmem>>, %arg5: memref<1x3xf32, #tpu.memory_space<vmem>>, %arg6: memref<32x128xbf16, #tpu.memory_space<vmem>>, %arg7: memref<1x128xf32, #tpu.memory_space<vmem>>, %arg8: memref<3x128xf32, #tpu.memory_space<vmem>>, %arg9: memref<2x128xf32, #tpu.memory_space<vmem>>) attributes {dimension_semantics = [#tpu.dimension_semantics<parallel>], iteration_bounds = array<i64: 1>, scalar_prefetch = 0 : i64, scratch_operands = 0 : i64, tpu.core_type = #tpu.core_type<tc>, window_params = [{transform_indices = @transform_0, window_bounds = array<i64: 2, 4, 32>}, {pipeline_mode = #tpu.pipeline_mode<synchronous>, transform_indices = @transform_1, window_bounds = array<i64: 32, 768>}, {pipeline_mode = #tpu.pipeline_mode<synchronous>, transform_indices = @transform_2, window_bounds = array<i64: 1, 768>}, {pipeline_mode = #tpu.pipeline_mode<synchronous>, transform_indices = @transform_3, window_bounds = array<i64: 768, 9>}, {pipeline_mode = #tpu.pipeline_mode<synchronous>, transform_indices = @transform_4, window_bounds = array<i64: 1, 3>}, {pipeline_mode = #tpu.pipeline_mode<synchronous>, transform_indices = @transform_5, window_bounds = array<i64: 32, 128>}, {pipeline_mode = #tpu.pipeline_mode<synchronous>, transform_indices = @transform_6, window_bounds = array<i64: 1, 128>}, {pipeline_mode = #tpu.pipeline_mode<synchronous>, transform_indices = @transform_7, window_bounds = array<i64: 3, 128>}, {transform_indices = @transform_8, window_bounds = array<i64: 2, 128>}]} {
    %c0 = arith.constant 0 : index
    %c0_0 = arith.constant 0 : index
    %c0_1 = arith.constant 0 : index
    %0 = vector.load %arg1[%c0, %c0_0, %c0_1] : memref<2x4x32xf32, #tpu.memory_space<vmem>>, vector<2x4x32xf32>
    %1 = vector.shape_cast %0 : vector<2x4x32xf32> to vector<8x32xf32>
    %2 = arith.truncf %1 : vector<8x32xf32> to vector<8x32xbf16>
    %c0_2 = arith.constant 0 : index
    %c0_3 = arith.constant 0 : index
    %3 = vector.load %arg2[%c0_2, %c0_3] : memref<32x768xbf16, #tpu.memory_space<vmem>>, vector<32x768xbf16>
    %cst = arith.constant dense<0.000000e+00> : vector<8x768xf32>
    %4 = tpu.matmul %2, %3, %cst {dimension_numbers = #tpu.dot_dimension_numbers<[1], [0], [0], [1], [0, 0, 1, 1], [], []>} : vector<8x32xbf16>, vector<32x768xbf16>, vector<8x768xf32> -> vector<8x768xf32>
    %c0_4 = arith.constant 0 : index
    %c0_5 = arith.constant 0 : index
    %5 = vector.load %arg3[%c0_4, %c0_5] : memref<1x768xf32, #tpu.memory_space<vmem>>, vector<1x768xf32>
    %6 = vector.broadcast %5 : vector<1x768xf32> to vector<8x768xf32>
    %7 = arith.addf %4, %6 : vector<8x768xf32>
    %cst_6 = arith.constant 0.000000e+00 : f32
    %8 = vector.broadcast %cst_6 : f32 to vector<8x768xf32>
    %9 = arith.maximumf %7, %8 : vector<8x768xf32>
    %10 = arith.truncf %9 : vector<8x768xf32> to vector<8x768xbf16>
    %c0_7 = arith.constant 0 : index
    %c0_8 = arith.constant 0 : index
    %11 = vector.load %arg4[%c0_7, %c0_8] : memref<768x9xbf16, #tpu.memory_space<vmem>>, vector<768x9xbf16>
    %cst_9 = arith.constant dense<0.000000e+00> : vector<8x9xf32>
    %12 = tpu.matmul %10, %11, %cst_9 {dimension_numbers = #tpu.dot_dimension_numbers<[1], [0], [0], [1], [0, 0, 1, 1], [], []>} : vector<8x768xbf16>, vector<768x9xbf16>, vector<8x9xf32> -> vector<8x9xf32>
    %13 = vector.shape_cast %12 : vector<8x9xf32> to vector<2x4x9xf32>
    %14 = vector.extract_strided_slice %13 {offsets = [0, 0, 0], sizes = [1, 4, 9], strides = [1, 1, 1]} : vector<2x4x9xf32> to vector<1x4x9xf32>
    %15 = vector.shape_cast %14 : vector<1x4x9xf32> to vector<4x9xf32>
    %16 = vector.extract_strided_slice %15 {offsets = [0, 0], sizes = [4, 3], strides = [1, 1]} : vector<4x9xf32> to vector<4x3xf32>
    %17 = vector.extract_strided_slice %15 {offsets = [0, 3], sizes = [4, 3], strides = [1, 1]} : vector<4x9xf32> to vector<4x3xf32>
    %18 = vector.extract_strided_slice %15 {offsets = [0, 6], sizes = [4, 3], strides = [1, 1]} : vector<4x9xf32> to vector<4x3xf32>
    %cst_10 = arith.constant 0.000000e+00 : f32
    %19 = vector.broadcast %cst_10 : f32 to vector<1x3xf32>
    %20 = vector.extract_strided_slice %16 {offsets = [0, 0], sizes = [3, 3], strides = [1, 1]} : vector<4x3xf32> to vector<3x3xf32>
    %21 = tpu.concatenate %19, %20 in 0 : vector<1x3xf32>, vector<3x3xf32> -> vector<4x3xf32>
    %22 = arith.addf %21, %17 : vector<4x3xf32>
    %23 = vector.extract_strided_slice %18 {offsets = [1, 0], sizes = [3, 3], strides = [1, 1]} : vector<4x3xf32> to vector<3x3xf32>
    %24 = tpu.concatenate %23, %19 in 0 : vector<3x3xf32>, vector<1x3xf32> -> vector<4x3xf32>
    %25 = arith.addf %22, %24 : vector<4x3xf32>
    %c0_11 = arith.constant 0 : index
    %c0_12 = arith.constant 0 : index
    %26 = vector.load %arg5[%c0_11, %c0_12] : memref<1x3xf32, #tpu.memory_space<vmem>>, vector<1x3xf32>
    %27 = vector.broadcast %26 : vector<1x3xf32> to vector<4x3xf32>
    %28 = arith.addf %25, %27 : vector<4x3xf32>
    %cst_13 = arith.constant 0.000000e+00 : f32
    %29 = vector.broadcast %cst_13 : f32 to vector<4x3xf32>
    %30 = arith.maximumf %28, %29 : vector<4x3xf32>
    %cst_14 = arith.constant dense<0xFF800000> : vector<3xf32>
    %31 = vector.multi_reduction <maximumf>, %30, %cst_14 [0] : vector<4x3xf32> to vector<3xf32>
    %32 = vector.shape_cast %31 : vector<3xf32> to vector<1x3xf32>
    %33 = vector.broadcast %32 : vector<1x3xf32> to vector<4x3xf32>
    %34 = arith.subf %30, %33 : vector<4x3xf32>
    %35 = math.exp %34 : vector<4x3xf32>
    %cst_15 = arith.constant dense<0.000000e+00> : vector<3xf32>
    %36 = vector.multi_reduction <add>, %35, %cst_15 [0] : vector<4x3xf32> to vector<3xf32>
    %37 = vector.shape_cast %36 : vector<3xf32> to vector<1x3xf32>
    %38 = vector.broadcast %37 : vector<1x3xf32> to vector<4x3xf32>
    %39 = arith.divf %35, %38 : vector<4x3xf32>
    %40 = vector.extract_strided_slice %0 {offsets = [0, 0, 0], sizes = [1, 4, 32], strides = [1, 1, 1]} : vector<2x4x32xf32> to vector<1x4x32xf32>
    %41 = vector.shape_cast %40 : vector<1x4x32xf32> to vector<4x32xf32>
    %cst_16 = arith.constant dense<0.000000e+00> : vector<3x32xf32>
    %42 = tpu.matmul %39, %41, %cst_16 {dimension_numbers = #tpu.dot_dimension_numbers<[0], [0], [1], [1], [0, 1, 1, 1], [], []>} : vector<4x3xf32>, vector<4x32xf32>, vector<3x32xf32> -> vector<3x32xf32>
    %43 = arith.truncf %42 : vector<3x32xf32> to vector<3x32xbf16>
    %c0_17 = arith.constant 0 : index
    %c0_18 = arith.constant 0 : index
    %44 = vector.load %arg6[%c0_17, %c0_18] : memref<32x128xbf16, #tpu.memory_space<vmem>>, vector<32x128xbf16>
    %cst_19 = arith.constant dense<0.000000e+00> : vector<3x128xf32>
    %45 = tpu.matmul %43, %44, %cst_19 {dimension_numbers = #tpu.dot_dimension_numbers<[1], [0], [0], [1], [0, 0, 1, 1], [], []>} : vector<3x32xbf16>, vector<32x128xbf16>, vector<3x128xf32> -> vector<3x128xf32>
    %c0_20 = arith.constant 0 : index
    %c0_21 = arith.constant 0 : index
    %46 = vector.load %arg8[%c0_20, %c0_21] : memref<3x128xf32, #tpu.memory_space<vmem>>, vector<3x128xf32>
    %47 = arith.mulf %45, %46 : vector<3x128xf32>
    %cst_22 = arith.constant dense<0.000000e+00> : vector<128xf32>
    %48 = vector.multi_reduction <add>, %47, %cst_22 [0] : vector<3x128xf32> to vector<128xf32>
    %49 = vector.shape_cast %48 : vector<128xf32> to vector<1x128xf32>
    %c0_23 = arith.constant 0 : index
    %c0_24 = arith.constant 0 : index
    %50 = vector.load %arg7[%c0_23, %c0_24] : memref<1x128xf32, #tpu.memory_space<vmem>>, vector<1x128xf32>
    %51 = arith.addf %49, %50 : vector<1x128xf32>
    %52 = vector.extract_strided_slice %13 {offsets = [1, 0, 0], sizes = [1, 4, 9], strides = [1, 1, 1]} : vector<2x4x9xf32> to vector<1x4x9xf32>
    %53 = vector.shape_cast %52 : vector<1x4x9xf32> to vector<4x9xf32>
    %54 = vector.extract_strided_slice %53 {offsets = [0, 0], sizes = [4, 3], strides = [1, 1]} : vector<4x9xf32> to vector<4x3xf32>
    %55 = vector.extract_strided_slice %53 {offsets = [0, 3], sizes = [4, 3], strides = [1, 1]} : vector<4x9xf32> to vector<4x3xf32>
    %56 = vector.extract_strided_slice %53 {offsets = [0, 6], sizes = [4, 3], strides = [1, 1]} : vector<4x9xf32> to vector<4x3xf32>
    %cst_25 = arith.constant 0.000000e+00 : f32
    %57 = vector.broadcast %cst_25 : f32 to vector<1x3xf32>
    %58 = vector.extract_strided_slice %54 {offsets = [0, 0], sizes = [3, 3], strides = [1, 1]} : vector<4x3xf32> to vector<3x3xf32>
    %59 = tpu.concatenate %57, %58 in 0 : vector<1x3xf32>, vector<3x3xf32> -> vector<4x3xf32>
    %60 = arith.addf %59, %55 : vector<4x3xf32>
    %61 = vector.extract_strided_slice %56 {offsets = [1, 0], sizes = [3, 3], strides = [1, 1]} : vector<4x3xf32> to vector<3x3xf32>
    %62 = tpu.concatenate %61, %57 in 0 : vector<3x3xf32>, vector<1x3xf32> -> vector<4x3xf32>
    %63 = arith.addf %60, %62 : vector<4x3xf32>
    %c0_26 = arith.constant 0 : index
    %c0_27 = arith.constant 0 : index
    %64 = vector.load %arg5[%c0_26, %c0_27] : memref<1x3xf32, #tpu.memory_space<vmem>>, vector<1x3xf32>
    %65 = vector.broadcast %64 : vector<1x3xf32> to vector<4x3xf32>
    %66 = arith.addf %63, %65 : vector<4x3xf32>
    %cst_28 = arith.constant 0.000000e+00 : f32
    %67 = vector.broadcast %cst_28 : f32 to vector<4x3xf32>
    %68 = arith.maximumf %66, %67 : vector<4x3xf32>
    %cst_29 = arith.constant dense<0xFF800000> : vector<3xf32>
    %69 = vector.multi_reduction <maximumf>, %68, %cst_29 [0] : vector<4x3xf32> to vector<3xf32>
    %70 = vector.shape_cast %69 : vector<3xf32> to vector<1x3xf32>
    %71 = vector.broadcast %70 : vector<1x3xf32> to vector<4x3xf32>
    %72 = arith.subf %68, %71 : vector<4x3xf32>
    %73 = math.exp %72 : vector<4x3xf32>
    %cst_30 = arith.constant dense<0.000000e+00> : vector<3xf32>
    %74 = vector.multi_reduction <add>, %73, %cst_30 [0] : vector<4x3xf32> to vector<3xf32>
    %75 = vector.shape_cast %74 : vector<3xf32> to vector<1x3xf32>
    %76 = vector.broadcast %75 : vector<1x3xf32> to vector<4x3xf32>
    %77 = arith.divf %73, %76 : vector<4x3xf32>
    %78 = vector.extract_strided_slice %0 {offsets = [1, 0, 0], sizes = [1, 4, 32], strides = [1, 1, 1]} : vector<2x4x32xf32> to vector<1x4x32xf32>
    %79 = vector.shape_cast %78 : vector<1x4x32xf32> to vector<4x32xf32>
    %cst_31 = arith.constant dense<0.000000e+00> : vector<3x32xf32>
    %80 = tpu.matmul %77, %79, %cst_31 {dimension_numbers = #tpu.dot_dimension_numbers<[0], [0], [1], [1], [0, 1, 1, 1], [], []>} : vector<4x3xf32>, vector<4x32xf32>, vector<3x32xf32> -> vector<3x32xf32>
    %81 = arith.truncf %80 : vector<3x32xf32> to vector<3x32xbf16>
    %c0_32 = arith.constant 0 : index
    %c0_33 = arith.constant 0 : index
    %82 = vector.load %arg6[%c0_32, %c0_33] : memref<32x128xbf16, #tpu.memory_space<vmem>>, vector<32x128xbf16>
    %cst_34 = arith.constant dense<0.000000e+00> : vector<3x128xf32>
    %83 = tpu.matmul %81, %82, %cst_34 {dimension_numbers = #tpu.dot_dimension_numbers<[1], [0], [0], [1], [0, 0, 1, 1], [], []>} : vector<3x32xbf16>, vector<32x128xbf16>, vector<3x128xf32> -> vector<3x128xf32>
    %c0_35 = arith.constant 0 : index
    %c0_36 = arith.constant 0 : index
    %84 = vector.load %arg8[%c0_35, %c0_36] : memref<3x128xf32, #tpu.memory_space<vmem>>, vector<3x128xf32>
    %85 = arith.mulf %83, %84 : vector<3x128xf32>
    %cst_37 = arith.constant dense<0.000000e+00> : vector<128xf32>
    %86 = vector.multi_reduction <add>, %85, %cst_37 [0] : vector<3x128xf32> to vector<128xf32>
    %87 = vector.shape_cast %86 : vector<128xf32> to vector<1x128xf32>
    %c0_38 = arith.constant 0 : index
    %c0_39 = arith.constant 0 : index
    %88 = vector.load %arg7[%c0_38, %c0_39] : memref<1x128xf32, #tpu.memory_space<vmem>>, vector<1x128xf32>
    %89 = arith.addf %87, %88 : vector<1x128xf32>
    %90 = tpu.concatenate %51, %89 in 0 : vector<1x128xf32>, vector<1x128xf32> -> vector<2x128xf32>
    %c0_40 = arith.constant 0 : index
    %c0_41 = arith.constant 0 : index
    %91 = vector.load %arg9[%c0_40, %c0_41] : memref<2x128xf32, #tpu.memory_space<vmem>>, vector<2x128xf32>
    tpu.vector_store %arg9[%c0_40, %c0_41], %90 {strides = array<i32>} : memref<2x128xf32, #tpu.memory_space<vmem>>, vector<2x128xf32>,
    return
  }
  func.func @transform_0(%arg0: i32) -> (i32, i32, i32) {
    %c0_i32 = arith.constant 0 : i32
    %c0_i32_0 = arith.constant 0 : i32
    %c0_i32_1 = arith.constant 0 : i32
    return %arg0, %c0_i32, %c0_i32_0 : i32, i32, i32
  }
  func.func @transform_1(%arg0: i32) -> (i32, i32) {
    %c0_i32 = arith.constant 0 : i32
    %c0_i32_0 = arith.constant 0 : i32
    %c0_i32_1 = arith.constant 0 : i32
    return %c0_i32, %c0_i32_0 : i32, i32
  }
  func.func @transform_2(%arg0: i32) -> (i32, i32) {
    %c0_i32 = arith.constant 0 : i32
    %c0_i32_0 = arith.constant 0 : i32
    %c0_i32_1 = arith.constant 0 : i32
    return %c0_i32, %c0_i32_0 : i32, i32
  }
  func.func @transform_3(%arg0: i32) -> (i32, i32) {
    %c0_i32 = arith.constant 0 : i32
    %c0_i32_0 = arith.constant 0 : i32
    %c0_i32_1 = arith.constant 0 : i32
    return %c0_i32, %c0_i32_0 : i32, i32
  }
  func.func @transform_4(%arg0: i32) -> (i32, i32) {
    %c0_i32 = arith.constant 0 : i32
    %c0_i32_0 = arith.constant 0 : i32
    %c0_i32_1 = arith.constant 0 : i32
    return %c0_i32, %c0_i32_0 : i32, i32
  }
  func.func @transform_5(%arg0: i32) -> (i32, i32) {
    %c0_i32 = arith.constant 0 : i32
    %c0_i32_0 = arith.constant 0 : i32
    %c0_i32_1 = arith.constant 0 : i32
    return %c0_i32, %c0_i32_0 : i32, i32
  }
  func.func @transform_6(%arg0: i32) -> (i32, i32) {
    %c0_i32 = arith.constant 0 : i32
    %c0_i32_0 = arith.constant 0 : i32
    %c0_i32_1 = arith.constant 0 : i32
    return %c0_i32, %c0_i32_0 : i32, i32
  }
  func.func @transform_7(%arg0: i32) -> (i32, i32) {
    %c0_i32 = arith.constant 0 : i32
    %c0_i32_0 = arith.constant 0 : i32
    %c0_i32_1 = arith.constant 0 : i32
    return %c0_i32, %c0_i32_0 : i32, i32
  }
  func.func @transform_8(%arg0: i32) -> (i32, i32) {
    %c0_i32 = arith.constant 0 : i32
    %c0_i32_0 = arith.constant 0 : i32
    return %arg0, %c0_i32 : i32, i32
  }
}

</mosaic_0001>

<bundles_post_ra>
// kernel: forward_pallas.5
= control target key start
LH: loop header
LB: loop body
LE: loop exit
PB: predicated region body
PF: predicated region fallthrough
CT: control target
= control target key end

     0   :  { %v108_v0 = vmov 0.0   ;;  %vm109_vm0 = vmmov 0   ;;  %vm40_vm1 = vcmask 261120   ;;  %s145_s1 = inlined_call_operand.vmem [shape: bf16[32,128], index: 1, kind: input, shape index: {}]   ;;  %s146_s0 = inlined_call_operand.vmem [shape: f32[8,32], index: 0, kind: input, shape index: {}]   ;;  %s147_s2 = inlined_call_operand.vmem [shape: f32[1,128], index: 2, kind: input, shape index: {}]   ;;  %s148_s3 = inlined_call_operand.vmem [shape: f32[8,128], index: 3, kind: output, shape index: {}]  }
   0x1   :  { %96 = vmatprep.subr.bf16.mxu0 %v108_v0  ;;  %v106_v1 = vld [vmem:[%s145_s1 + $0x8] sm:$0xff]   ;;  %100 = vmatprep.mubr.msk.bf16.mxu0 %vm109_vm0, %v108_v0  ;;  %v107_v2 = vld [vmem:[%s145_s1] sm:$0xff]  }
   0x2   :  { %97 = vmatpush3.bf16.msra.mxu0 %v106_v1  ;;  %v15_v3 = vld [vmem:[%s146_s0] sm:$0xff] }
   0x3   :  { %98 = vmatprep.subr.bf16.mxu0 %v108_v0  ;;  %v16_v4 = vpack.c.bf16 %v15_v3, %v15_v3  ;;  %v89_v5 = vld [vmem:[%s147_s2] ss:$0 sm:$0xff] }
   0x6   :  { %99 = vmatpush3.bf16.msra.mxu0 %v107_v2 }
   0x9   :  { %101 = vmatmul.mubr.msk.bf16.vlgmr.msra.gmra.mxu0 %vm40_vm1, %v16_v4 }
  0xc9   :  { %v78_v6 = vpop.f32.mrf.mxu0 }
  0xca   :  { %v79_v7 = vadd.f32 %v89_v5, %v78_v6 }
  0xcb   :  { %v102_v8 = vpop.f32.mrf.mxu0 }
  0xcc   :  { %84 = vst [vmem:[%s148_s3] sm:$0xff] %v79_v7 }
  0xcd   :  { %v81_v9 = vpop.f32.mrf.mxu0 }
  0xcf   :  { %v103_v10 = vpop.f32.mrf.mxu0 }

// kernel: forward_pallas.4
= control target key start
LH: loop header
LB: loop body
LE: loop exit
PB: predicated region body
PF: predicated region fallthrough
CT: control target
= control target key end

     0   :  { %vm252_vm0 = vcmask 261120   ;;  %vm887_vm1 = vcmask 1041409   ;;  %vm889_vm2 = vcmask 1042434   ;;  %vm891_vm3 = vcmask 1043459   ;;  %s1365_s1 = inlined_call_operand.vmem [shape: bf16[32,32], index: 1, kind: input, shape index: {}]   ;;  %s1366_s0 = inlined_call_operand.vmem [shape: bf16[8,64,32], index: 0, kind: input, shape index: {}]   ;;  %s1367_s2 = inlined_call_operand.vmem [shape: f32[8,32], index: 2, kind: output, shape index: {}]  }
   0x1   :  { %v1079_v0 = vld [vmem:[%s1365_s1 + $0x8] sm:$0xff]   ;;  %v1080_v1 = vld [vmem:[%s1365_s1] sm:$0xff]   ;;  %v1085_v6 = vld [vmem:[%s1366_s0 + $0x10] sm:$0xff]   ;;  %vm893_vm4 = vcmask 1044484   ;;  %vm895_vm5 = vcmask 1045509   ;;  %vm897_vm6 = vcmask 1046534  }
   0x2   :  { %1007 = vmatprep.subr.bf16.mxu0 %v1079_v0  ;;  %1075 = vmatprep.subr.bf16.mxu1 %v1079_v0  ;;  %v1081_v2 = vld [vmem:[%s1366_s0] sm:$0xff]   ;;  %v1083_v4 = vld [vmem:[%s1366_s0 + $0x8] sm:$0xff]   ;;  %v1086_v7 = vld [vmem:[%s1366_s0 + $0x90] sm:$0xff]   ;;  %vm899_vm7 = vcmask 1047559  }
   0x3   :  { %1008 = vmatpush3.bf16.msra.mxu0 %v1079_v0  ;;  %1077 = vmatpush3.bf16.msra.mxu1 %v1079_v0  ;;  %v1082_v3 = vld [vmem:[%s1366_s0 + $0x80] sm:$0xff]   ;;  %v1084_v5 = vld [vmem:[%s1366_s0 + $0x88] sm:$0xff]   ;;  %v1087_v8 = vld [vmem:[%s1366_s0 + $0x18] sm:$0xff]  }
   0x4   :  { %1009 = vmatprep.subr.bf16.mxu0 %v1080_v1  ;;  %1076 = vmatprep.subr.bf16.mxu1 %v1080_v1  ;;  %v1088_v9 = vld [vmem:[%s1366_s0 + $0x98] sm:$0xff]   ;;  %v1089_v10 = vld [vmem:[%s1366_s0 + $0x20] sm:$0xff]   ;;  %v1091_v12 = vld [vmem:[%s1366_s0 + $0x28] sm:$0xff]  }
   0x5   :  { %1011 = vmatprep.mubr.msk.bf16.mxu0 %vm252_vm0, %v1081_v2  ;;  %1043 = vmatprep.mubr.msk.bf16.mxu1 %vm252_vm0, %v1082_v3  ;;  %v1090_v11 = vld [vmem:[%s1366_s0 + $0xa0] sm:$0xff]   ;;  %v1092_v13 = vld [vmem:[%s1366_s0 + $0xa8] sm:$0xff]   ;;  %v1093_v14 = vld [vmem:[%s1366_s0 + $0x30] sm:$0xff]  }
   0x6   :  { %v1094_v15 = vld [vmem:[%s1366_s0 + $0xb0] sm:$0xff]   ;;  %v1095_v16 = vld [vmem:[%s1366_s0 + $0x38] sm:$0xff]   ;;  %v1097_v18 = vld [vmem:[%s1366_s0 + $0x40] sm:$0xff]  }
   0x7   :  { %1010 = vmatpush3.bf16.msra.mxu0 %v1080_v1  ;;  %1078 = vmatpush3.bf16.msra.mxu1 %v1080_v1  ;;  %v1096_v17 = vld [vmem:[%s1366_s0 + $0xb8] sm:$0xff]   ;;  %v1098_v19 = vld [vmem:[%s1366_s0 + $0xc0] sm:$0xff]   ;;  %v1099_v20 = vld [vmem:[%s1366_s0 + $0x48] sm:$0xff]  }
   0x8   :  { %v1100_v21 = vld [vmem:[%s1366_s0 + $0xc8] sm:$0xff]   ;;  %v1101_v22 = vld [vmem:[%s1366_s0 + $0x50] sm:$0xff]   ;;  %v1103_v24 = vld [vmem:[%s1366_s0 + $0x58] sm:$0xff]  }
   0x9   :  { %v1102_v23 = vld [vmem:[%s1366_s0 + $0xd0] sm:$0xff]   ;;  %v1104_v25 = vld [vmem:[%s1366_s0 + $0xd8] sm:$0xff]   ;;  %v1105_v26 = vld [vmem:[%s1366_s0 + $0x60] sm:$0xff]  }
   0xa   :  { %1012 = vmatmul.mubr.msk.bf16.vlgmr.msra.gmra.mxu0 %vm252_vm0, %v1083_v4  ;;  %1044 = vmatmul.mubr.msk.bf16.vlgmr.msra.gmra.mxu1 %vm252_vm0, %v1084_v5  ;;  %v1106_v27 = vld [vmem:[%s1366_s0 + $0xe0] sm:$0xff]   ;;  %v1107_v28 = vld [vmem:[%s1366_s0 + $0x68] sm:$0xff]   ;;  %v1109_v30 = vld [vmem:[%s1366_s0 + $0x70] sm:$0xff]  }
   0xb   :  { %1015 = vmatprep.mubr.msk.bf16.mxu0 %vm252_vm0, %v1085_v6  ;;  %1047 = vmatprep.mubr.msk.bf16.mxu1 %vm252_vm0, %v1086_v7  ;;  %v1108_v29 = vld [vmem:[%s1366_s0 + $0xe8] sm:$0xff]   ;;  %v1110_v31 = vld [vmem:[%s1366_s0 + $0xf0] sm:$0xff]   ;;  %v1111_v32 = vld [vmem:[%s1366_s0 + $0x78] sm:$0xff]  }
   0xc   :  { %v1112_v33 = vld [vmem:[%s1366_s0 + $0xf8] sm:$0xff]  }
  0x12   :  { %1016 = vmatmul.mubr.msk.bf16.gmra.mxu0 %vm252_vm0, %v1087_v8  ;;  %1048 = vmatmul.mubr.msk.bf16.gmra.mxu1 %vm252_vm0, %v1088_v9 }
  0x13   :  { %1019 = vmatprep.mubr.msk.bf16.mxu0 %vm252_vm0, %v1089_v10  ;;  %1051 = vmatprep.mubr.msk.bf16.mxu1 %vm252_vm0, %v1090_v11 }
  0x1a   :  { %1020 = vmatmul.mubr.msk.bf16.gmra.mxu0 %vm252_vm0, %v1091_v12  ;;  %1052 = vmatmul.mubr.msk.bf16.gmra.mxu1 %vm252_vm0, %v1092_v13 }
  0x1b   :  { %1023 = vmatprep.mubr.msk.bf16.mxu0 %vm252_vm0, %v1093_v14  ;;  %1055 = vmatprep.mubr.msk.bf16.mxu1 %vm252_vm0, %v1094_v15 }
  0x22   :  { %1024 = vmatmul.mubr.msk.bf16.gmra.mxu0 %vm252_vm0, %v1095_v16  ;;  %1056 = vmatmul.mubr.msk.bf16.gmra.mxu1 %vm252_vm0, %v1096_v17 }
  0x23   :  { %1027 = vmatprep.mubr.msk.bf16.mxu0 %vm252_vm0, %v1097_v18  ;;  %1059 = vmatprep.mubr.msk.bf16.mxu1 %vm252_vm0, %v1098_v19 }
  0x2a   :  { %1028 = vmatmul.mubr.msk.bf16.gmra.mxu0 %vm252_vm0, %v1099_v20  ;;  %1060 = vmatmul.mubr.msk.bf16.gmra.mxu1 %vm252_vm0, %v1100_v21 }
  0x2b   :  { %1031 = vmatprep.mubr.msk.bf16.mxu0 %vm252_vm0, %v1101_v22  ;;  %1063 = vmatprep.mubr.msk.bf16.mxu1 %vm252_vm0, %v1102_v23 }
  0x32   :  { %1032 = vmatmul.mubr.msk.bf16.gmra.mxu0 %vm252_vm0, %v1103_v24  ;;  %1064 = vmatmul.mubr.msk.bf16.gmra.mxu1 %vm252_vm0, %v1104_v25 }
  0x33   :  { %1035 = vmatprep.mubr.msk.bf16.mxu0 %vm252_vm0, %v1105_v26  ;;  %1067 = vmatprep.mubr.msk.bf16.mxu1 %vm252_vm0, %v1106_v27 }
  0x3a   :  { %1036 = vmatmul.mubr.msk.bf16.gmra.mxu0 %vm252_vm0, %v1107_v28  ;;  %1068 = vmatmul.mubr.msk.bf16.gmra.mxu1 %vm252_vm0, %v1108_v29 }
  0x3b   :  { %1039 = vmatprep.mubr.msk.bf16.mxu0 %vm252_vm0, %v1109_v30  ;;  %1071 = vmatprep.mubr.msk.bf16.mxu1 %vm252_vm0, %v1110_v31 }
  0x42   :  { %1040 = vmatmul.mubr.msk.bf16.gmra.mxu0 %vm252_vm0, %v1111_v32  ;;  %1072 = vmatmul.mubr.msk.bf16.gmra.mxu1 %vm252_vm0, %v1112_v33 }
  0xca   :  { %v1013_v34 = vpop.f32.mrf.mxu0  ;;  %v1045_v35 = vpop.f32.mrf.mxu1 }
  0xcb   :  { %v640_v46 = vmax.f32 %v1013_v34, 0.0  ;;  %v672_v55 = vmax.f32 %v1045_v35, 0.0 }
  0xcc   :  { %v383_v36 = vpop.f32.mrf.mxu0  ;;  %v511_v37 = vpop.f32.mrf.mxu1 }
  0xcd   :  { %v638_v40 = vmax.f32 %v383_v36, 0.0  ;;  %v670_v43 = vmax.f32 %v511_v37, 0.0  ;;  %v705_v57 = vsel %vm252_vm0, %v640_v46, 0.0  ;;  %v789_v1 = vsel %vm252_vm0, %v672_v55, 0.0 }
  0xce   :  { %v1014_v38 = vpop.f32.mrf.mxu0  ;;  %v1046_v39 = vpop.f32.mrf.mxu1 }
  0xcf   :  { %v702_v49 = vsel %vm252_vm0, %v638_v40, 0.0  ;;  %v786_v56 = vsel %vm252_vm0, %v670_v43, 0.0  ;;  %v641_v58 = vmax.f32 %v1014_v38, 0.0  ;;  %v673_v2 = vmax.f32 %v1046_v39, 0.0 }
  0xd0   :  { %v386_v41 = vpop.f32.mrf.mxu0  ;;  %v514_v42 = vpop.f32.mrf.mxu1 }
  0xd1   :  { %v639_v44 = vmax.f32 %v386_v41, 0.0  ;;  %v671_v45 = vmax.f32 %v514_v42, 0.0  ;;  %v707_v3 = vsel %vm252_vm0, %v641_v58, 0.0  ;;  %v791_v13 = vsel %vm252_vm0, %v673_v2, 0.0 }
  0xd2   :  { %v1017_v47 = vpop.f32.mrf.mxu0  ;;  %v1262_v48 = vpop.f32.mrf.mxu1 }
  0xd3   :  { %v703_v50 = vsel %vm252_vm0, %v639_v44, 0.0  ;;  %v787_v51 = vsel %vm252_vm0, %v671_v45, 0.0  ;;  %v644_v28 = vmax.f32 %v1017_v47, 0.0  ;;  %v676_v41 = vmax.f32 %v1262_v48, 0.0 }
  0xd4   :  { %v704_v52 = vadd.f32 %v703_v50, %v702_v49  ;;  %v399_v53 = vpop.f32.mrf.mxu0  ;;  %v527_v54 = vpop.f32.mrf.mxu1  ;;  %v788_v59 = vadd.f32 %v787_v51, %v786_v56 }
  0xd5   :  { %v642_v5 = vmax.f32 %v399_v53, 0.0  ;;  %v674_v9 = vmax.f32 %v527_v54, 0.0  ;;  %v713_v44 = vsel %vm252_vm0, %v644_v28, 0.0  ;;  %v797_v56 = vsel %vm252_vm0, %v676_v41, 0.0 }
  0xd6   :  { %v1269_v60 = vpop.f32.mrf.mxu0  ;;  %v1271_v61 = vpop.f32.mrf.mxu1  ;;  %v706_v62 = vadd.f32 %v705_v57, %v704_v52  ;;  %v790_v4 = vadd.f32 %v789_v1, %v788_v59 }
  0xd7   :  { %v709_v14 = vsel %vm252_vm0, %v642_v5, 0.0  ;;  %v793_v20 = vsel %vm252_vm0, %v674_v9, 0.0  ;;  %v645_v45 = vmax.f32 %v1269_v60, 0.0  ;;  %v677_v60 = vmax.f32 %v1271_v61, 0.0 }
  0xd8   :  { %v402_v63 = vpop.f32.mrf.mxu0  ;;  %v530_v0 = vpop.f32.mrf.mxu1  ;;  %v708_v8 = vadd.f32 %v707_v3, %v706_v62  ;;  %v792_v15 = vadd.f32 %v791_v13, %v790_v4 }
  0xd9   :  { %v643_v10 = vmax.f32 %v402_v63, 0.0  ;;  %v675_v16 = vmax.f32 %v530_v0, 0.0  ;;  %v715_v59 = vsel %vm252_vm0, %v645_v45, 0.0 }
  0xda   :  { %v1021_v6 = vpop.f32.mrf.mxu0  ;;  %v1053_v7 = vpop.f32.mrf.mxu1  ;;  %v710_v19 = vadd.f32 %v709_v14, %v708_v8  ;;  %v794_v29 = vadd.f32 %v793_v20, %v792_v15 }
  0xdb   :  { %v711_v22 = vsel %vm252_vm0, %v643_v10, 0.0  ;;  %v795_v30 = vsel %vm252_vm0, %v675_v16, 0.0  ;;  %v648_v31 = vmax.f32 %v1021_v6, 0.0  ;;  %v680_v42 = vmax.f32 %v1053_v7, 0.0 }
  0xdc   :  { %v415_v11 = vpop.f32.mrf.mxu0  ;;  %v543_v12 = vpop.f32.mrf.mxu1  ;;  %v712_v34 = vadd.f32 %v711_v22, %v710_v19  ;;  %v796_v46 = vadd.f32 %v795_v30, %v794_v29 }
  0xdd   :  { %v646_v21 = vmax.f32 %v415_v11, 0.0  ;;  %v678_v25 = vmax.f32 %v543_v12, 0.0  ;;  %v726_v52 = vsel %vm252_vm0, %v648_v31, 0.0  ;;  %v810_v57 = vsel %vm252_vm0, %v680_v42, 0.0 }
  0xde   :  { %v1022_v17 = vpop.f32.mrf.mxu0  ;;  %v1054_v18 = vpop.f32.mrf.mxu1  ;;  %v714_v51 = vadd.f32 %v713_v44, %v712_v34  ;;  %v798_v62 = vadd.f32 %v797_v56, %v796_v46  ;;  %v799_v11 = vsel %vm252_vm0, %v677_v60, 0.0 }
  0xdf   :  { %v723_v35 = vsel %vm252_vm0, %v646_v21, 0.0  ;;  %v807_v43 = vsel %vm252_vm0, %v678_v25, 0.0  ;;  %v649_v53 = vmax.f32 %v1022_v17, 0.0  ;;  %v681_v58 = vmax.f32 %v1054_v18, 0.0 }
  0xe0   :  { %v418_v23 = vpop.f32.mrf.mxu0  ;;  %v546_v24 = vpop.f32.mrf.mxu1  ;;  %v1300_v2 = vadd.f32 %v715_v59, %v714_v51  ;;  %v1306_v17 = vadd.f32 %v799_v11, %v798_v62 }
  0xe1   :  { %v647_v26 = vmax.f32 %v418_v23, 0.0  ;;  %v679_v27 = vmax.f32 %v546_v24, 0.0  ;;  %v728_v3 = vsel %vm252_vm0, %v649_v53, 0.0  ;;  %v812_v10 = vsel %vm252_vm0, %v681_v58, 0.0 }
  0xe2   :  { %v1280_v32 = vpop.f32.mrf.mxu0  ;;  %v1282_v33 = vpop.f32.mrf.mxu1  ;;  %v717_v16 = vrot.slane %v1300_v2, 4 }
  0xe3   :  { %v724_v36 = vsel %vm252_vm0, %v647_v26, 0.0  ;;  %v808_v37 = vsel %vm252_vm0, %v679_v27, 0.0  ;;  %v652_v20 = vmax.f32 %v1280_v32, 0.0  ;;  %v684_v30 = vmax.f32 %v1282_v33, 0.0 }
  0xe4   :  { %v725_v38 = vadd.f32 %v724_v36, %v723_v35  ;;  %v431_v39 = vpop.f32.mrf.mxu0  ;;  %v559_v40 = vpop.f32.mrf.mxu1  ;;  %v809_v47 = vadd.f32 %v808_v37, %v807_v43 }
  0xe5   :  { %v650_v4 = vmax.f32 %v431_v39, 0.0  ;;  %v682_v5 = vmax.f32 %v559_v40, 0.0  ;;  %v734_v53 = vsel %vm252_vm0, %v652_v20, 0.0  ;;  %v818_v58 = vsel %vm252_vm0, %v684_v30, 0.0 }
  0xe6   :  { %v1291_v49 = vpop.f32.mrf.mxu0  ;;  %v1293_v50 = vpop.f32.mrf.mxu1  ;;  %v727_v54 = vadd.f32 %v726_v52, %v725_v38  ;;  %v811_v63 = vadd.f32 %v810_v57, %v809_v47 }
  0xe7   :  { %v730_v18 = vsel %vm252_vm0, %v650_v4, 0.0  ;;  %v814_v19 = vsel %vm252_vm0, %v682_v5, 0.0 }
  0xe8   :  { %v434_v55 = vpop.f32.mrf.mxu0  ;;  %v562_v48 = vpop.f32.mrf.mxu1  ;;  %v729_v6 = vadd.f32 %v728_v3, %v727_v54  ;;  %v813_v12 = vadd.f32 %v812_v10, %v811_v63  ;;  %v653_v54 = vmax.f32 %v1291_v49, 0.0  ;;  %v685_v10 = vmax.f32 %v1293_v50, 0.0 }
  0xe9   :  { %v651_v7 = vmax.f32 %v434_v55, 0.0  ;;  %v683_v23 = vmax.f32 %v562_v48, 0.0 }
  0xea   :  { %v1029_v0 = vpop.f32.mrf.mxu0  ;;  %v1061_v1 = vpop.f32.mrf.mxu1  ;;  %v731_v21 = vadd.f32 %v730_v18, %v729_v6  ;;  %v815_v31 = vadd.f32 %v814_v19, %v813_v12 }
  0xeb   :  { %v732_v22 = vsel %vm252_vm0, %v651_v7, 0.0  ;;  %v656_v26 = vmax.f32 %v1029_v0, 0.0  ;;  %v688_v27 = vmax.f32 %v1061_v1, 0.0  ;;  %v816_v42 = vsel %vm252_vm0, %v683_v23, 0.0 }
  0xec   :  { %v447_v8 = vpop.f32.mrf.mxu0  ;;  %v575_v9 = vpop.f32.mrf.mxu1  ;;  %v733_v41 = vadd.f32 %v732_v22, %v731_v21  ;;  %v817_v0 = vadd.f32 %v816_v42, %v815_v31 }
  0xed   :  { %v654_v61 = vmax.f32 %v447_v8, 0.0  ;;  %v686_v13 = vmax.f32 %v575_v9, 0.0  ;;  %v747_v46 = vsel %vm252_vm0, %v656_v26, 0.0  ;;  %v831_v47 = vsel %vm252_vm0, %v688_v27, 0.0 }
  0xee   :  { %v1030_v14 = vpop.f32.mrf.mxu0  ;;  %v1062_v15 = vpop.f32.mrf.mxu1  ;;  %v735_v63 = vadd.f32 %v734_v53, %v733_v41  ;;  %v736_v9 = vsel %vm252_vm0, %v653_v54, 0.0  ;;  %v819_v21 = vadd.f32 %v818_v58, %v817_v0  ;;  %v801_v26 = vrot.slane %v1306_v17, 4 }
  0xef   :  { %v744_v34 = vsel %vm252_vm0, %v654_v61, 0.0  ;;  %v828_v35 = vsel %vm252_vm0, %v686_v13, 0.0  ;;  %v657_v32 = vmax.f32 %v1030_v14, 0.0  ;;  %v689_v38 = vmax.f32 %v1062_v15, 0.0 }
  0xf0   :  { %v450_v24 = vpop.f32.mrf.mxu0  ;;  %v578_v25 = vpop.f32.mrf.mxu1  ;;  %v737_v20 = vadd.f32 %v736_v9, %v735_v63 }
  0xf1   :  { %v655_v28 = vmax.f32 %v450_v24, 0.0  ;;  %v687_v29 = vmax.f32 %v578_v25, 0.0  ;;  %v749_v59 = vsel %vm252_vm0, %v657_v32, 0.0  ;;  %v833_v60 = vsel %vm252_vm0, %v689_v38, 0.0 }
  0xf2   :  { %v1033_v36 = vpop.f32.mrf.mxu0  ;;  %v1065_v37 = vpop.f32.mrf.mxu1  ;;  %v738_v38 = vrot.slane %v737_v20, 4 }
  0xf3   :  { %v745_v39 = vsel %vm252_vm0, %v655_v28, 0.0  ;;  %v829_v40 = vsel %vm252_vm0, %v687_v29, 0.0  ;;  %v660_v6 = vmax.f32 %v1033_v36, 0.0  ;;  %v692_v14 = vmax.f32 %v1065_v37, 0.0 }
  0xf4   :  { %v746_v43 = vadd.f32 %v745_v39, %v744_v34  ;;  %v830_v44 = vadd.f32 %v829_v40, %v828_v35  ;;  %v463_v45 = vpop.f32.mrf.mxu0  ;;  %v591_v33 = vpop.f32.mrf.mxu1  ;;  %v1336_v35 = vadd.f32 %v717_v16, %v1300_v2  ;;  %v820_v36 = vsel %vm252_vm0, %v685_v10, 0.0 }
  0xf5   :  { %v658_v51 = vmax.f32 %v463_v45, 0.0  ;;  %v690_v52 = vmax.f32 %v591_v33, 0.0  ;;  %v755_v50 = vsel %vm252_vm0, %v660_v6, 0.0  ;;  %v839_v37 = vsel %vm252_vm0, %v692_v14, 0.0 }
  0xf6   :  { %v748_v55 = vadd.f32 %v747_v46, %v746_v43  ;;  %v832_v48 = vadd.f32 %v831_v47, %v830_v44  ;;  %v1034_v56 = vpop.f32.mrf.mxu0  ;;  %v1066_v57 = vpop.f32.mrf.mxu1  ;;  %v821_v39 = vadd.f32 %v820_v36, %v819_v21 }
  0xf7   :  { %v835_v62 = vsel %vm252_vm0, %v690_v52, 0.0  ;;  %v751_v49 = vsel %vm252_vm0, %v658_v51, 0.0  ;;  %v661_v15 = vmax.f32 %v1034_v56, 0.0  ;;  %v693_v27 = vmax.f32 %v1066_v57, 0.0 }
  0xf8   :  { %v750_v1 = vadd.f32 %v749_v59, %v748_v55  ;;  %v834_v3 = vadd.f32 %v833_v60, %v832_v48  ;;  %v466_v4 = vpop.f32.mrf.mxu0  ;;  %v594_v5 = vpop.f32.mrf.mxu1  ;;  %v802_v57 = vadd.f32 %v801_v26, %v1306_v17  ;;  %v822_v10 = vrot.slane %v821_v39, 4 }
  0xf9   :  { %v659_v7 = vmax.f32 %v466_v4, 0.0  ;;  %v691_v8 = vmax.f32 %v594_v5, 0.0  ;;  %v757_v32 = vsel %vm252_vm0, %v661_v15, 0.0  ;;  %v841_v47 = vsel %vm252_vm0, %v693_v27, 0.0 }
  0xfa   :  { %v752_v11 = vadd.f32 %v751_v49, %v750_v1  ;;  %v836_v12 = vadd.f32 %v835_v62, %v834_v3  ;;  %v1037_v61 = vpop.f32.mrf.mxu0  ;;  %v1069_v13 = vpop.f32.mrf.mxu1  ;;  %v739_v5 = vadd.f32 %v738_v38, %v737_v20 }
  0xfb   :  { %v753_v18 = vsel %vm252_vm0, %v659_v7, 0.0  ;;  %v837_v19 = vsel %vm252_vm0, %v691_v8, 0.0  ;;  %v664_v44 = vmax.f32 %v1037_v61, 0.0  ;;  %v696_v45 = vmax.f32 %v1069_v13, 0.0 }
  0xfc   :  { %v754_v22 = vadd.f32 %v753_v18, %v752_v11  ;;  %v838_v23 = vadd.f32 %v837_v19, %v836_v12  ;;  %v479_v24 = vpop.f32.mrf.mxu0  ;;  %v607_v25 = vpop.f32.mrf.mxu1 }
  0xfd   :  { %v662_v29 = vmax.f32 %v479_v24, 0.0  ;;  %v694_v30 = vmax.f32 %v607_v25, 0.0  ;;  %v768_v0 = vsel %vm252_vm0, %v664_v44, 0.0  ;;  %v852_v1 = vsel %vm252_vm0, %v696_v45, 0.0 }
  0xfe   :  { %v756_v28 = vadd.f32 %v755_v50, %v754_v22  ;;  %v1038_v31 = vpop.f32.mrf.mxu0  ;;  %v1070_v34 = vpop.f32.mrf.mxu1  ;;  %v840_v41 = vadd.f32 %v839_v37, %v838_v23  ;;  %v740_v24 = vrot.slane %v739_v5, 2  ;;  %v803_v44 = vrot.slane %v802_v57, 2 }
  0xff   :  { %v765_v16 = vsel %vm252_vm0, %v662_v29, 0.0  ;;  %v849_v51 = vsel %vm252_vm0, %v694_v30, 0.0  ;;  %v665_v54 = vmax.f32 %v1038_v31, 0.0  ;;  %v697_v55 = vmax.f32 %v1070_v34, 0.0 }
 0x100   :  { %v758_v40 = vadd.f32 %v757_v32, %v756_v28  ;;  %v482_v42 = vpop.f32.mrf.mxu0  ;;  %v610_v43 = vpop.f32.mrf.mxu1  ;;  %v842_v58 = vadd.f32 %v841_v47, %v840_v41  ;;  %v719_v31 = vrot.slane %v1336_v35, 2  ;;  %v823_v34 = vadd.f32 %v822_v10, %v821_v39 }
 0x101   :  { %v663_v33 = vmax.f32 %v482_v42, 0.0  ;;  %v695_v46 = vmax.f32 %v610_v43, 0.0  ;;  %v770_v17 = vsel %vm252_vm0, %v665_v54, 0.0  ;;  %v854_v11 = vsel %vm252_vm0, %v697_v55, 0.0 }
 0x102   :  { %v759_v2 = vrot.slane %v758_v40, 4  ;;  %v1041_v52 = vpop.f32.mrf.mxu0  ;;  %v1073_v53 = vpop.f32.mrf.mxu1  ;;  %v843_v61 = vrot.slane %v842_v58, 4  ;;  %v741_v41 = vadd.f32 %v740_v24, %v739_v5  ;;  %v720_v47 = vadd.f32 %v719_v31, %v1336_v35 }
 0x103   :  { %v766_v48 = vsel %vm252_vm0, %v663_v33, 0.0  ;;  %v850_v56 = vsel %vm252_vm0, %v695_v46, 0.0  ;;  %v668_v13 = vmax.f32 %v1041_v52, 0.0  ;;  %v700_v21 = vmax.f32 %v1073_v53, 0.0 }
 0x104   :  { %v767_v59 = vadd.f32 %v766_v48, %v765_v16  ;;  %v851_v60 = vadd.f32 %v850_v56, %v849_v51  ;;  %v495_v62 = vpop.f32.mrf.mxu0  ;;  %v623_v63 = vpop.f32.mrf.mxu1  ;;  %v760_v6 = vadd.f32 %v759_v2, %v758_v40  ;;  %v844_v32 = vadd.f32 %v843_v61, %v842_v58 }
 0x105   :  { %v666_v3 = vmax.f32 %v495_v62, 0.0  ;;  %v698_v4 = vmax.f32 %v623_v63, 0.0  ;;  %v776_v38 = vsel %vm252_vm0, %v668_v13, 0.0  ;;  %v860_v40 = vsel %vm252_vm0, %v700_v21, 0.0 }
 0x106   :  { %v769_v49 = vadd.f32 %v768_v0, %v767_v59  ;;  %v853_v7 = vadd.f32 %v852_v1, %v851_v60  ;;  %v1042_v8 = vpop.f32.mrf.mxu0  ;;  %v1074_v9 = vpop.f32.mrf.mxu1  ;;  %v761_v25 = vrot.slane %v760_v6, 2  ;;  %v824_v2 = vrot.slane %v823_v34, 2 }
 0x107   :  { %v856_v12 = vsel %vm252_vm0, %v698_v4, 0.0  ;;  %v772_v20 = vsel %vm252_vm0, %v666_v3, 0.0  ;;  %v669_v27 = vmax.f32 %v1042_v8, 0.0  ;;  %v701_v28 = vmax.f32 %v1074_v9, 0.0 }
 0x108   :  { %v771_v14 = vadd.f32 %v770_v17, %v769_v49  ;;  %v855_v15 = vadd.f32 %v854_v11, %v853_v7  ;;  %v498_v18 = vpop.f32.mrf.mxu0  ;;  %v626_v19 = vpop.f32.mrf.mxu1  ;;  %v762_v45 = vadd.f32 %v761_v25, %v760_v6  ;;  %v845_v51 = vrot.slane %v844_v32, 2 }
 0x109   :  { %v667_v22 = vmax.f32 %v498_v18, 0.0  ;;  %v699_v23 = vmax.f32 %v626_v19, 0.0  ;;  %v778_v33 = vsel %vm252_vm0, %v669_v27, 0.0  ;;  %v862_v46 = vsel %vm252_vm0, %v701_v28, 0.0 }
 0x10a   :  { %v773_v26 = vadd.f32 %v772_v20, %v771_v14  ;;  %v857_v50 = vadd.f32 %v856_v12, %v855_v15  ;;  %v742_v52 = vrot.slane %v741_v41, 1  ;;  %v804_v55 = vadd.f32 %v803_v44, %v802_v57 }
 0x10b   :  { %v774_v29 = vsel %vm252_vm0, %v667_v22, 0.0  ;;  %v858_v30 = vsel %vm252_vm0, %v699_v23, 0.0  ;;  %v763_v48 = vrot.slane %v762_v45, 1  ;;  %v721_v56 = vrot.slane %v720_v47, 1 }
 0x10c   :  { %v775_v36 = vadd.f32 %v774_v29, %v773_v26  ;;  %v859_v37 = vadd.f32 %v858_v30, %v857_v50  ;;  %v825_v58 = vadd.f32 %v824_v2, %v823_v34  ;;  %v846_v62 = vadd.f32 %v845_v51, %v844_v32 }
 0x10d   :  { %v743_v63 = vadd.f32 %v742_v52, %v741_v41  ;;  %v805_v3 = vrot.slane %v804_v55, 1  ;;  %v764_v4 = vadd.f32 %v763_v48, %v762_v45  ;;  %v722_v35 = vadd.f32 %v721_v56, %v720_v47 }
 0x10e   :  { %v777_v42 = vadd.f32 %v776_v38, %v775_v36  ;;  %v861_v43 = vadd.f32 %v860_v40, %v859_v37  ;;  %v826_v5 = vrot.slane %v825_v58, 1  ;;  %v847_v7 = vrot.slane %v846_v62, 1 }
 0x10f   :  { %v872_v8 = vmul.f32 0.015625, %v743_v63  ;;  %v806_v57 = vadd.f32 %v805_v3, %v804_v55  ;;  %v873_v17 = vmul.f32 0.015625, %v764_v4  ;;  %v871_v11 = vmul.f32 0.015625, %v722_v35 }
 0x110   :  { %v779_v39 = vadd.f32 %v778_v33, %v777_v42  ;;  %v863_v16 = vadd.f32 %v862_v46, %v861_v43  ;;  %v827_v12 = vadd.f32 %v826_v5, %v825_v58  ;;  %v848_v13 = vadd.f32 %v847_v7, %v846_v62 }
 0x111   :  { %v888_v14 = vsel %vm887_vm1, %v872_v8, %v871_v11  ;;  %v875_v19 = vmul.f32 0.015625, %v806_v57 }
 0x112   :  { %v780_v53 = vrot.slane %v779_v39, 4  ;;  %v864_v54 = vrot.slane %v863_v16, 4  ;;  %v890_v21 = vsel %vm889_vm2, %v873_v17, %v888_v14  ;;  %v876_v20 = vmul.f32 0.015625, %v827_v12 }
 0x113   :  { %v877_v23 = vmul.f32 0.015625, %v848_v13 }
 0x114   :  { %v781_v59 = vadd.f32 %v780_v53, %v779_v39  ;;  %v865_v60 = vadd.f32 %v864_v54, %v863_v16 }
 0x116   :  { %v782_v0 = vrot.slane %v781_v59, 2  ;;  %v866_v1 = vrot.slane %v865_v60, 2 }
 0x118   :  { %v783_v6 = vadd.f32 %v782_v0, %v781_v59  ;;  %v867_v49 = vadd.f32 %v866_v1, %v865_v60 }
 0x11a   :  { %v784_v9 = vrot.slane %v783_v6, 1  ;;  %v868_v10 = vrot.slane %v867_v49, 1 }
 0x11c   :  { %v785_v61 = vadd.f32 %v784_v9, %v783_v6  ;;  %v869_v18 = vadd.f32 %v868_v10, %v867_v49 }
 0x11e   :  { %v874_v15 = vmul.f32 0.015625, %v785_v61  ;;  %v878_v25 = vmul.f32 0.015625, %v869_v18 }
 0x120   :  { %v892_v22 = vsel %vm891_vm3, %v874_v15, %v890_v21 }
 0x121   :  { %v894_v24 = vsel %vm893_vm4, %v875_v19, %v892_v22 }
 0x122   :  { %v896_v26 = vsel %vm895_vm5, %v876_v20, %v894_v24 }
 0x123   :  { %v898_v50 = vsel %vm897_vm6, %v877_v23, %v896_v26 }
 0x124   :  { %v900_v27 = vsel %vm899_vm7, %v878_v25, %v898_v50 }
 0x125   :  { %902 = vst.msk [vmem:[%s1367_s2] sm:$0xff] %vm252_vm0, %v900_v27 }

// kernel: forward_pallas.6
= control target key start
LH: loop header
LB: loop body
LE: loop exit
PB: predicated region body
PF: predicated region fallthrough
CT: control target
= control target key end

     0   :  { %s447_s12 = smov 0   ;;  %s488_s0 = inlined_call_operand.vmem [shape: f32[4,2,128], index: 0, kind: input, shape index: {}]   ;;  %s489_s1 = inlined_call_operand.vmem [shape: f32[4,2,32], index: 1, kind: input, shape index: {}]   ;;  %s490_s2 = inlined_call_operand.vmem [shape: bf16[32,128], index: 2, kind: input, shape index: {}]   ;;  %s491_s3 = inlined_call_operand.vmem [shape: f32[4,2,32], index: 3, kind: output, shape index: {}]  }
   0x1 LB: > { %s363_s13 = sadd.s32 4294967295, %s419_s12   ;;  %p367_p0 = scmp.ge.s32.totalorder %s419_s12, 1  ;;  %s419_s12 = sphi %s447_s12, %s13_s12  }
   0x2   : > { %p145_p1 = scmp.lt.s32.totalorder %s419_s12, 5 }
   0x4   : > { %p146_p2 = pnand %p367_p0, %p145_p1 }
   0x5   : > { %p171_p3 = scmp.lt.s32.totalorder (!%p146_p2), %s363_s13, 3  ;;  %p371_p4 = scmp.ne.s32.totalorder (!%p146_p2), %s363_s13, 0 }
   0x6   : > { %149 = sbr.rel (%p146_p2) target bundleno = 720 (0x2d0), region = 32 }
   0xb   : > { %s172_s14 = scalar_select %p171_p3, %s363_s13, 3 }
   0xc   : > { %187 = sbr.rel (%p371_p4) target bundleno = 19 (0x13), region = 36 }
   0xd   : > { %s455_s15 = sshll.u32 %s172_s14, 1 }
   0xe   : > { %s174_s18 = scalar_lea.vmem %s488_s0, %s455_s15  ;;  %s178_s21 = scalar_lea.vmem %s489_s1, %s455_s15 }
   0xf   : > { %s182_s24 = scalar_lea.vmem %s491_s3, %s455_s15 }
  0x11   : > { %vm188_vm0 = vcmask 254976   ;;  %v421_v0 = vmov 0.0  }
  0x12   : > { %189 = vst.msk [vmem:[#allocation2] sm:$0x3] %vm188_vm0, %v421_v0  ;;  %190 = vst.msk [vmem:[#allocation3] sm:$0x3] %vm188_vm0, %v421_v0 }
  0x13 PF: > { %v403_v1 = vld [vmem:[%s490_s2 + $0x8] sm:$0xff]   ;;  %v422_v2 = vmov 0.0   ;;  %v404_v3 = vld [vmem:[%s490_s2] sm:$0xff]   ;;  %vm423_vm1 = vmmov 0   ;;  %vm210_vm2 = vcmask 261120   ;;  %s424_s29 = smov 64  }
  0x14   : > { %381 = vmatprep.subr.bf16.mxu0 %v422_v2  ;;  %385 = vmatprep.mubr.msk.bf16.mxu0 %vm423_vm1, %v422_v2  ;;  %v191_v6 = vld [vmem:[%s174_s18] sm:$0x3]  ;;  %s425_s30 = smov 32   ;;  %s426_s4 = smov 96   ;;  %vm288_vm3 = vcmask 254976  }
  0x15   : > { %382 = vmatpush3.bf16.msra.mxu0 %v403_v1  ;;  %v295_v28 = vld [vmem:[%s178_s21] sm:$0x3] }
  0x16   : > { %383 = vmatprep.subr.bf16.mxu0 %v422_v2 }
  0x19   : > { %v192_v4 = vld [vmem:[#allocation2] sm:$0x3]  ;;  %384 = vmatpush3.bf16.msra.mxu0 %v404_v3  ;;  %v262_v13 = vld [vmem:[#allocation3] sm:$0x3] }
  0x1a   : > { %v193_v5 = vpack.c.bf16 %v192_v4, %v192_v4 }
  0x1c   : > { %386 = vmatmul.mubr.msk.bf16.vlgmr.msra.gmra.mxu0 %vm210_vm2, %v193_v5 }
  0xdc   : > { %v248_v7 = vpop.f32.mrf.mxu0 }
  0xdd   : > { %v254_v8 = vadd.f32 %v248_v7, %v191_v6 }
  0xde   : > { %v387_v9 = vpop.f32.mrf.mxu0 }
  0xdf   : > { %405 = vtanh.f32 %v254_v8  ;;  %v375_v14 = vmul.f32 -1.442695, %v254_v8 }
  0xe0   : > { %v251_v10 = vpop.f32.mrf.mxu0 }
  0xe1   : > { %407 = vpow2.f32 %v375_v14 }
  0xe2   : > { %v388_v11 = vpop.f32.mrf.mxu0 }
  0xec   : > { %v406_v12 = vpop.eup %405 }
  0xed   : > { %269 = vrot.lane.b32.xlu0 %v406_v12, %s424_s29 }
  0xee   : > { %v408_v15 = vpop.eup %407 }
  0xef   : > { %v258_v16 = vadd.f32 1.0, %v408_v15 }
  0xf1   : > { %264 = vrot.lane.b32.xlu0 %v262_v13, %s425_s30  ;;  %409 = vrcp.f32 %v258_v16 }
  0xfe   : > { %v410_v17 = vpop.eup %409 }
 0x15f   : > { %v270_v18 = vpop.permute.xlu0 %269 }
 0x160   : > { %v272_v19 = vmul.f32 %v410_v17, %v270_v18 }
 0x162   : > { %274 = vrot.lane.b32.xlu1 %v272_v19, %s425_s30 }
 0x163   : > { %v265_v20 = vpop.permute.xlu0 %264 }
 0x164   : > { %v267_v21 = vmul.f32 %v410_v17, %v265_v20 }
 0x1d4   : > { %v275_v22 = vpop.permute.xlu1 %274 }
 0x1d5   : > { %v277_v23 = vadd.f32 %v275_v22, %v267_v21 }
 0x1d7   : > { %411 = vtanh.f32 %v277_v23 }
 0x1e4   : > { %v412_v24 = vpop.eup %411 }
 0x1e5   : > { %280 = vrot.lane.b32.xlu1 %v412_v24, %s424_s29 }
 0x1e9   : > { %285 = vrot.lane.b32.xlu1 %v277_v23, %s426_s4 }
 0x257   : > { %v281_v25 = vpop.permute.xlu1 %280 }
 0x258   : > { %v283_v26 = vmul.f32 %v410_v17, %v281_v25 }
 0x25a   : > { %291 = vrot.lane.b32.xlu0 %v283_v26, %s425_s30 }
 0x25b   : > { %v286_v27 = vpop.permute.xlu1 %285 }
 0x25c   : > { %289 = vst.msk [vmem:[#allocation3] sm:$0x3] %vm288_vm3, %v286_v27 }
 0x2cc   : > { %v292_v29 = vpop.permute.xlu0 %291 }
 0x2cd   : > { %294 = vst.msk [vmem:[#allocation2] sm:$0x3] %vm288_vm3, %v292_v29  ;;  %v296_v30 = vadd.f32 %v295_v28, %v292_v29 }
 0x2cf   : > { %297 = vst.msk [vmem:[%s182_s24] sm:$0x3] %vm288_vm3, %v296_v30 }
 0x2d0 PF: > { %s13_s12 = sadd.s32 1, %s419_s12  }
 0x2d1   : > { %p10_p5 = scmp.ge.s32.totalorder %s13_s12, 6  }
 0x2d3   :  { %12 = sbr.rel (!%p10_p5) target bundleno = 1 (0x1), region = 69 }

// kernel: forward_pallas.7
= control target key start
LH: loop header
LB: loop body
LE: loop exit
PB: predicated region body
PF: predicated region fallthrough
CT: control target
= control target key end

     0   :  { %v1473_v1 = vmov 0   ;;  %vm141_vm0 = vcmask 261120   ;;  %v51_v50 = vlaneseq  ;;  %vm796_vm1 = vcmask 1042432   ;;  %s1475_s10 = smov 122   ;;  %s1782_s1 = inlined_call_operand.vmem [shape: bf16[32,768], index: 1, kind: input, shape index: {}]   ;;  %s1783_s0 = inlined_call_operand.vmem [shape: f32[2,4,32], index: 0, kind: input, shape index: {}]   ;;  %s1784_s3 = inlined_call_operand.vmem [shape: bf16[768,9], index: 3, kind: input, shape index: {}]   ;;  %s1785_s2 = inlined_call_operand.vmem [shape: f32[1,768], index: 2, kind: input, shape index: {}]   ;;  %s1786_s4 = inlined_call_operand.vmem [shape: f32[1,3], index: 4, kind: input, shape index: {}]   ;;  %s1787_s5 = inlined_call_operand.vmem [shape: bf16[32,128], index: 5, kind: input, shape index: {}]   ;;  %s1788_s7 = inlined_call_operand.vmem [shape: f32[3,128], index: 7, kind: input, shape index: {}]   ;;  %s1789_s6 = inlined_call_operand.vmem [shape: f32[1,128], index: 6, kind: input, shape index: {}]   ;;  %s1790_s8 = inlined_call_operand.vmem [shape: f32[2,128], index: 8, kind: output, shape index: {}]  }
   0x1   :  { %v1396_v0 = vld [vmem:[%s1782_s1 + $0x34] ss:$24 sps:$4 sm:$0xff]   ;;  %177 = vmatprep.mubr.bf16.mxu0 %v1473_v1  ;;  %218 = vmatprep.mubr.bf16.mxu1 %v1473_v1  ;;  %v1400_v3 = vld [vmem:[%s1782_s1 + $0x30] ss:$24 sps:$4 sm:$0xff]   ;;  %v1402_v5 = vld [vmem:[%s1782_s1 + $0x4] ss:$24 sps:$4 sm:$0xff]  }
   0x2   :  { %v1398_v2 = vld [vmem:[%s1782_s1 + $0x3c] ss:$24 sps:$4 sm:$0xff]   ;;  %157 = vmatprep.subr.bf16.mxu0 %v1396_v0  ;;  %v1401_v4 = vld [vmem:[%s1782_s1 + $0x38] ss:$24 sps:$4 sm:$0xff]   ;;  %v1404_v6 = vld [vmem:[%s1782_s1 + $0xc] ss:$24 sps:$4 sm:$0xff]  }
   0x3   :  { %198 = vmatprep.subr.bf16.mxu1 %v1398_v2  ;;  %158 = vmatpush1.bf16.msra.mxu0 %v1400_v3  ;;  %v1406_v7 = vld [vmem:[%s1782_s1] ss:$24 sps:$4 sm:$0xff]   ;;  %v1555_v10 = vld [vmem:[%s1783_s0 + $0x4] sm:$0xf]  ;;  %v1414_v15 = vld [vmem:[%s1782_s1 + $0x14] ss:$24 sps:$4 sm:$0xff]  }
   0x4   :  { %199 = vmatpush1.bf16.msra.mxu1 %v1401_v4  ;;  %159 = vmatprep.subr.bf16.mxu0 %v1402_v5  ;;  %v1407_v8 = vld [vmem:[%s1782_s1 + $0x8] ss:$24 sps:$4 sm:$0xff]   ;;  %v1411_v12 = vld [vmem:[%s1782_s1 + $0x44] ss:$24 sps:$4 sm:$0xff]   ;;  %v1419_v20 = vld [vmem:[%s1784_s3 + $0x70] sm:$0xff]   ;;  %v1673_v51 = vshrl.u32 %v51_v50, 7 }
   0x5   :  { %v1550_v9 = vld [vmem:[%s1783_s0] sm:$0xf]  ;;  %200 = vmatprep.subr.bf16.mxu1 %v1404_v6  ;;  %v1415_v16 = vld [vmem:[%s1784_s3 + $0x78] sm:$0xff]   ;;  %v1412_v18 = vld [vmem:[%s1782_s1 + $0x10] ss:$24 sps:$4 sm:$0xff]   ;;  %vm868_vm2 = vcmask 1043456  }
   0x6   :  { %v34_v11 = vcombine.low %v1550_v9, %v1555_v10  ;;  %v1409_v14 = vld [vmem:[%s1782_s1 + $0x40] ss:$24 sps:$4 sm:$0xff]   ;;  %v1420_v21 = vld [vmem:[%s1784_s3 + $0x30] sm:$0xff]   ;;  %v1423_v24 = vld [vmem:[%s1784_s3 + $0x68] sm:$0xff]   ;;  %v53_v52 = vsub.s32 0, %v1673_v51  ;;  %v61_v53 = vsub.s32 2, %v1673_v51 }
   0x7   :  { %160 = vmatpush1.bf16.msra.mxu0 %v1406_v7  ;;  %v1416_v17 = vld [vmem:[%s1784_s3 + $0x38] sm:$0xff]   ;;  %v1421_v23 = vld [vmem:[%s1784_s3 + $0xf0] sm:$0xff]   ;;  %v1424_v25 = vld [vmem:[%s1784_s3 + $0x28] sm:$0xff]   ;;  %v57_v55 = vsub.s32 1, %v1673_v51  ;;  %v65_v56 = vsub.s32 3, %v1673_v51  ;;  %v73_v6 = vsub.s32 5, %v1673_v51 }
   0x8   :  { %201 = vmatpush1.bf16.msra.mxu1 %v1407_v8  ;;  %v36_v13 = vpack.c.bf16 %v34_v11, %v34_v11  ;;  %239 = vmatprep.subr.bf16.mxu0 %v1411_v12  ;;  %v1417_v19 = vld [vmem:[%s1784_s3 + $0xf8] sm:$0xff]   ;;  %v1422_v26 = vld [vmem:[%s1784_s3 + $0xb0] sm:$0xff]   ;;  %v1425_v27 = vld [vmem:[%s1784_s3 + $0xe8] sm:$0xff]   ;;  %vm1477_vm3 = vmmov 0   ;;  %vm788_vm4 = vcmask 1040384   ;;  %vm812_vm5 = vcmask 19456  }
   0x9   :  { %1289 = vmatprep.subr.bf16.mxu1 %v1415_v16  ;;  %v1418_v22 = vld [vmem:[%s1784_s3 + $0xb8] sm:$0xff]   ;;  %v1427_v28 = vld [vmem:[%s1784_s3 + $0x60] sm:$0xff]   ;;  %v1426_v30 = vld [vmem:[%s1784_s3 + $0xa8] sm:$0xff]   ;;  %vm864_vm6 = vcmask 31744  }
   0xa   :  { %1229 = vmatmul.mubr.msk.bf16.vlgmr.msra.gmra.mxu0 %vm141_vm0, %v36_v13  ;;  %v1428_v29 = vld [vmem:[%s1784_s3 + $0x20] sm:$0xff]   ;;  %v1431_v32 = vld [vmem:[%s1784_s3 + $0x58] sm:$0xff]   ;;  %v1435_v36 = vld [vmem:[%s1784_s3 + $0x50] sm:$0xff]  }
   0xb   :  { %1230 = vmatmul.mubr.msk.bf16.vlgmr.msra.gmra.mxu1 %vm141_vm0, %v36_v13  ;;  %240 = vmatpush1.bf16.msra.mxu0 %v1409_v14  ;;  %v1429_v31 = vld [vmem:[%s1784_s3 + $0xe0] sm:$0xff]   ;;  %v1432_v33 = vld [vmem:[%s1784_s3 + $0x18] sm:$0xff]   ;;  %v1436_v37 = vld [vmem:[%s1784_s3 + $0x10] sm:$0xff]  }
   0xc   :  { %259 = vmatprep.mubr.bf16.mxu0 %v1473_v1  ;;  %241 = vmatprep.subr.bf16.mxu0 %v1414_v15  ;;  %v1430_v34 = vld [vmem:[%s1784_s3 + $0xa0] sm:$0xff]   ;;  %v1433_v35 = vld [vmem:[%s1784_s3 + $0xd8] sm:$0xff]   ;;  %v1437_v39 = vld [vmem:[%s1784_s3 + $0xd0] sm:$0xff]  }
   0xd   :  { %1290 = vmatpush3.bf16.msra.mxu1 %v1416_v17  ;;  %v1434_v38 = vld [vmem:[%s1784_s3 + $0x98] sm:$0xff]   ;;  %v1438_v40 = vld [vmem:[%s1784_s3 + $0x90] sm:$0xff]   ;;  %v1439_v41 = vld [vmem:[%s1784_s3 + $0x48] sm:$0xff]  }
   0xe   :  { %1291 = vmatprep.subr.bf16.mxu1 %v1419_v20  ;;  %v1440_v42 = vld [vmem:[%s1784_s3 + $0x8] sm:$0xff]   ;;  %v1443_v45 = vld [vmem:[%s1784_s3 + $0x40] sm:$0xff]   ;;  %v1447_v49 = vld [vmem:[%s1784_s3 + $0x178] sm:$0xff]  }
   0xf   :  { %242 = vmatpush1.bf16.msra.mxu0 %v1412_v18  ;;  %v1441_v43 = vld [vmem:[%s1784_s3 + $0xc8] sm:$0xff]   ;;  %v1444_v46 = vld [vmem:[%s1784_s3] sm:$0xff]  }
  0x10   :  { %1311 = vmatprep.subr.bf16.mxu0 %v1417_v19  ;;  %v1442_v44 = vld [vmem:[%s1784_s3 + $0x88] sm:$0xff]   ;;  %v1445_v47 = vld [vmem:[%s1784_s3 + $0xc0] sm:$0xff]   ;;  %v1448_v19 = vld [vmem:[%s1784_s3 + $0x138] sm:$0xff]  }
  0x11   :  { %1292 = vmatpush3.bf16.msra.mxu1 %v1420_v21  ;;  %v1446_v48 = vld [vmem:[%s1784_s3 + $0x80] sm:$0xff]  }
  0x12   :  { %1231 = vmatmul.mubr.msk.bf16.vlgmr.msra.gmra.mxu0 %vm141_vm0, %v36_v13  ;;  %1293 = vmatprep.subr.bf16.mxu1 %v1423_v24  ;;  %v49_v54 = vld [vmem:[%s1785_s2] sm:$0x3f] }
  0x13   :  { %1312 = vmatpush3.bf16.msra.mxu0 %v1418_v22  ;;  %v54_v57 = vrot.slane %v49_v54, %v53_v52  ;;  %v62_v58 = vrot.slane %v49_v54, %v61_v53  ;;  %v58_v59 = vrot.slane %v49_v54, %v57_v55  ;;  %v66_v60 = vrot.slane %v49_v54, %v65_v56  ;;  %v1449_v22 = vld [vmem:[%s1784_s3 + $0x170] sm:$0xff]  }
  0x14   :  { %1313 = vmatprep.subr.bf16.mxu0 %v1421_v23  ;;  %v74_v20 = vrot.slane %v49_v54, %v73_v6  ;;  %v1476_v6 = vmov 0.0  }
  0x15   :  { %1294 = vmatpush3.bf16.msra.mxu1 %v1424_v25  ;;  %v1450_v25 = vld [vmem:[%s1784_s3 + $0x130] sm:$0xff]  }
  0x16   :  { %1295 = vmatprep.subr.bf16.mxu1 %v1427_v28 }
  0x17   :  { %1314 = vmatpush3.bf16.msra.mxu0 %v1422_v26 }
  0x18   :  { %1315 = vmatprep.subr.bf16.mxu0 %v1425_v27  ;;  %v1451_v27 = vld [vmem:[%s1784_s3 + $0x168] sm:$0xff]  }
  0x19   :  { %1296 = vmatpush3.bf16.msra.mxu1 %v1428_v29 }
  0x1a   :  { %1297 = vmatprep.subr.bf16.mxu1 %v1431_v32 }
  0x1b   :  { %1316 = vmatpush3.bf16.msra.mxu0 %v1426_v30 }
  0x1c   :  { %1317 = vmatprep.subr.bf16.mxu0 %v1429_v31  ;;  %v1452_v31 = vld [vmem:[%s1784_s3 + $0x128] sm:$0xff]  }
  0x1d   :  { %1298 = vmatpush3.bf16.msra.mxu1 %v1432_v33  ;;  %v1453_v33 = vld [vmem:[%s1784_s3 + $0x160] sm:$0xff]  }
  0x1e   :  { %1299 = vmatprep.subr.bf16.mxu1 %v1435_v36  ;;  %v1456_v36 = vld [vmem:[%s1784_s3 + $0x118] sm:$0xff]  }
  0x1f   :  { %1318 = vmatpush3.bf16.msra.mxu0 %v1430_v34  ;;  %v1454_v34 = vld [vmem:[%s1784_s3 + $0x120] sm:$0xff]  }
  0x20   :  { %1319 = vmatprep.subr.bf16.mxu0 %v1433_v35  ;;  %v1455_v35 = vld [vmem:[%s1784_s3 + $0x158] sm:$0xff]  }
  0x21   :  { %1300 = vmatpush3.bf16.msra.mxu1 %v1436_v37  ;;  %v69_v37 = vsub.s32 4, %v1673_v51 }
  0x22   :  { %1301 = vmatprep.subr.bf16.mxu1 %v1439_v41  ;;  %v1459_v41 = vld [vmem:[%s1784_s3 + $0x148] sm:$0xff]  }
  0x23   :  { %1320 = vmatpush3.bf16.msra.mxu0 %v1434_v38  ;;  %v1457_v38 = vld [vmem:[%s1784_s3 + $0x150] sm:$0xff]  }
  0x24   :  { %1321 = vmatprep.subr.bf16.mxu0 %v1437_v39  ;;  %v1458_v39 = vld [vmem:[%s1784_s3 + $0x110] sm:$0xff]  }
  0x25   :  { %1302 = vmatpush3.bf16.msra.mxu1 %v1440_v42  ;;  %v1460_v42 = vld [vmem:[%s1784_s3 + $0x108] sm:$0xff]  }
  0x26   :  { %1303 = vmatprep.subr.bf16.mxu1 %v1443_v45  ;;  %v1462_v45 = vld [vmem:[%s1784_s3 + $0x100] sm:$0xff]  }
  0x27   :  { %1322 = vmatpush3.bf16.msra.mxu0 %v1438_v40  ;;  %v70_v40 = vrot.slane %v49_v54, %v69_v37 }
  0x28   :  { %1323 = vmatprep.subr.bf16.mxu0 %v1441_v43 }
  0x29   :  { %1304 = vmatpush3.bf16.msra.mxu1 %v1444_v46 }
  0x2a   :  { %1333 = vmatprep.subr.bf16.mxu1 %v1447_v49 }
  0x2b   :  { %1324 = vmatpush3.bf16.msra.mxu0 %v1442_v44  ;;  %v1461_v44 = vld [vmem:[%s1784_s3 + $0x140] sm:$0xff]   ;;  %s1474_s3 = smov 125  }
  0x2c   :  { %1325 = vmatprep.subr.bf16.mxu0 %v1445_v47 }
  0x2f   :  { %1326 = vmatpush3.bf16.msra.mxu0 %v1446_v48 }
  0x30   :  { %1370 = vmatprep.subr.bf16.mxu0 %v1476_v6 }
  0xca   :  { %v179_v61 = vpop.f32.mrf.mxu0 }
  0xcb   :  { %v220_v62 = vpop.f32.mrf.mxu1  ;;  %v180_v63 = vadd.f32 %v179_v61, %v54_v57 }
  0xcc   :  { %v221_v0 = vadd.f32 %v220_v62, %v62_v58  ;;  %v181_v1 = vpop.f32.mrf.mxu0 }
  0xcd   :  { %v222_v2 = vpop.f32.mrf.mxu1  ;;  %v182_v4 = vadd.f32 %v181_v1, %v58_v59  ;;  %v268_v7 = vmax.f32 %v180_v63, 0.0 }
  0xce   :  { %v270_v3 = vmax.f32 %v221_v0, 0.0  ;;  %v223_v5 = vadd.f32 %v222_v2, %v66_v60  ;;  %v183_v8 = vpop.f32.mrf.mxu0 }
  0xcf   :  { %v224_v11 = vpop.f32.mrf.mxu1  ;;  %v269_v12 = vmax.f32 %v182_v4, 0.0  ;;  %v274_v21 = vpack.c.bf16 %v268_v7, %v268_v7 }
  0xd0   :  { %v271_v13 = vmax.f32 %v223_v5, 0.0  ;;  %v276_v14 = vpack.c.bf16 %v270_v3, %v270_v3  ;;  %v184_v15 = vpop.f32.mrf.mxu0 }
  0xd1   :  { %v225_v16 = vpop.f32.mrf.mxu1  ;;  %v275_v17 = vpack.c.bf16 %v269_v12, %v269_v12 }
  0xd2   :  { %v277_v18 = vpack.c.bf16 %v271_v13, %v271_v13  ;;  %v261_v23 = vpop.f32.mrf.mxu0  ;;  %v1280_v13 = vld [vmem:[%s1786_s4] ss:$0 sm:$0xff] }
  0xd3   :  { %696 = vmatprep.mubr.bf16.mxu1 %v275_v17  ;;  %v262_v43 = vadd.f32 %v261_v23, %v70_v40 }
  0xd4   :  { %736 = vmatprep.mubr.bf16.mxu0 %v277_v18  ;;  %697 = vmatmul.mubr.bf16.vlgmr.msra.gmra.mxu1 %v274_v21  ;;  %v263_v24 = vpop.f32.mrf.mxu0 }
  0xd5   :  { %737 = vmatmul.mubr.bf16.vlgmr.msra.gmra.mxu0 %v276_v14  ;;  %1334 = vmatpush3.bf16.msra.mxu1 %v1448_v19  ;;  %v264_v26 = vadd.f32 %v263_v24, %v74_v20  ;;  %v272_v46 = vmax.f32 %v262_v43, 0.0 }
  0xd6   :  { %1335 = vmatprep.subr.bf16.mxu1 %v1449_v22  ;;  %v265_v28 = vpop.f32.mrf.mxu0  ;;  %1374 = vmatprep.mubr.msk.bf16.mxu0 %vm1477_vm3, %v1476_v6 }
  0xd7   :  { %v273_v29 = vmax.f32 %v264_v26, 0.0  ;;  %v278_v47 = vpack.c.bf16 %v272_v46, %v272_v46 }
  0xd8   :  { %v266_v30 = vpop.f32.mrf.mxu0 }
  0xd9   :  { %1336 = vmatpush3.bf16.msra.mxu1 %v1450_v25  ;;  %v279_v32 = vpack.c.bf16 %v273_v29, %v273_v29 }
  0xda   :  { %1337 = vmatprep.subr.bf16.mxu1 %v1451_v27 }
  0xdb   :  { %776 = vmatprep.mubr.bf16.mxu1 %v279_v32 }
  0xdd   :  { %1338 = vmatpush3.bf16.msra.mxu1 %v1452_v31 }
  0xde   :  { %1339 = vmatprep.subr.bf16.mxu1 %v1453_v33 }
  0xe1   :  { %1340 = vmatpush3.bf16.msra.mxu1 %v1454_v34 }
  0xe2   :  { %1341 = vmatprep.subr.bf16.mxu1 %v1455_v35 }
  0xe5   :  { %1342 = vmatpush3.bf16.msra.mxu1 %v1456_v36  ;;  %v1463_v36 = vld [vmem:[%s1787_s5 + $0x8] sm:$0xff]  }
  0xe6   :  { %1343 = vmatprep.subr.bf16.mxu1 %v1457_v38  ;;  %1371 = vmatpush3.bf16.msra.mxu0 %v1463_v36 }
  0xe7   :  { %1372 = vmatprep.subr.bf16.mxu0 %v1476_v6 }
  0xe9   :  { %1344 = vmatpush3.bf16.msra.mxu1 %v1458_v39 }
  0xea   :  { %1345 = vmatprep.subr.bf16.mxu1 %v1459_v41 }
  0xed   :  { %1346 = vmatpush3.bf16.msra.mxu1 %v1460_v42 }
  0xee   :  { %1347 = vmatprep.subr.bf16.mxu1 %v1461_v44 }
  0xf1   :  { %1348 = vmatpush3.bf16.msra.mxu1 %v1462_v45 }
  0xf2   :  { %1365 = vmatprep.subr.mxu1 %v1476_v6 }
  0xf4   :  { %777 = vmatmul.mubr.bf16.vlgmr.msra.gmra.mxu1 %v278_v47 }
  0xf5   :  { %1367 = vmatprep.mubr.msk.f32.mxu1 %vm1477_vm3, %v1476_v6  ;;  %1366 = vmatpush3.msk.msra.mxu1 %vm868_vm2, %v1550_v9 }
 0x194   :  { %v1305_v48 = vpop.f32.mrf.mxu1 }
 0x195   :  { %v1327_v49 = vpop.f32.mrf.mxu0 }
 0x196   :  { %v1306_v50 = vpop.f32.mrf.mxu1 }
 0x197   :  { %v1328_v51 = vpop.f32.mrf.mxu0  ;;  %v1307_v56 = vadd.f32 %v1306_v50, %v1305_v48 }
 0x198   :  { %v1308_v52 = vpop.f32.mrf.mxu1  ;;  %v1329_v57 = vadd.f32 %v1328_v51, %v1327_v49 }
 0x199   :  { %v1330_v53 = vpop.f32.mrf.mxu0 }
 0x19a   :  { %v1309_v54 = vpop.f32.mrf.mxu1  ;;  %v739_v60 = vadd.f32 %v1329_v57, %v1307_v56 }
 0x19b   :  { %v1331_v55 = vpop.f32.mrf.mxu0 }
 0x1b4   :  { %v1349_v58 = vpop.f32.mrf.mxu1 }
 0x1b6   :  { %v1350_v59 = vpop.f32.mrf.mxu1 }
 0x1b7   :  { %v1351_v61 = vadd.f32 %v1350_v59, %v1349_v58 }
 0x1b8   :  { %v1352_v62 = vpop.f32.mrf.mxu1 }
 0x1b9   :  { %v779_v63 = vadd.f32 %v1351_v61, %v739_v60  ;;  %v1464_v60 = vld [vmem:[%s1787_s5] sm:$0xff]  }
 0x1ba   :  { %v1353_v0 = vpop.f32.mrf.mxu1  ;;  %1373 = vmatpush3.bf16.msra.mxu0 %v1464_v60 }
 0x1bb   :  { %790 = vrot.lane.b32.xlu0 %v779_v63, %s1474_s3  ;;  %v794_v1 = vrot.slane %v779_v63, 1  ;;  %v785_v2 = vcombine.high %v779_v63, %v779_v63  ;;  %v786_v7 = vrot.slane %v779_v63, 7  ;;  %1378 = vmatprep.subr.mxu0 %v1476_v6 }
 0x1bd   :  { %v797_v3 = vsel %vm796_vm1, %v794_v1, 0.0  ;;  %v1019_v4 = vrot.slane %v785_v2, 1  ;;  %v789_v11 = vsel %vm788_vm4, 0.0, %v786_v7  ;;  %v1012_v38 = vrot.slane %v785_v2, 7 }
 0x1bf   :  { %799 = vrot.lane.b32.xlu0 %v797_v3, %s1475_s10  ;;  %v1021_v5 = vsel %vm796_vm1, %v1019_v4, 0.0  ;;  %v1014_v40 = vsel %vm788_vm4, 0.0, %v1012_v38 }
 0x1c3   :  { %1023 = vrot.lane.b32.xlu0 %v1021_v5, %s1475_s10 }
 0x22d   :  { %v791_v8 = vpop.permute.xlu0 %790 }
 0x22e   :  { %v793_v12 = vadd.f32 %v791_v8, %v789_v11 }
 0x231   :  { %v800_v14 = vpop.permute.xlu0 %799 }
 0x232   :  { %v802_v15 = vadd.f32 %v800_v14, %v793_v12 }
 0x234   :  { %v810_v16 = vadd.f32 %v1280_v13, %v802_v15  ;;  %v1001_v15 = vld [vmem:[%s1788_s7] sm:$0x7] }
 0x235   :  { %v1024_v42 = vpop.permute.xlu0 %1023 }
 0x236   :  { %v811_v9 = vmax.f32 %v810_v16, 0.0 }
 0x238   :  { %v813_v17 = vsel %vm812_vm5, %v811_v9, -inf }
 0x239   :  { %v814_v18 = vrot.slane %v813_v17, 4 }
 0x23b   :  { %v815_v19 = vmax.f32 %v813_v17, %v814_v18 }
 0x23d   :  { %v816_v20 = vrot.slane %v815_v19, 2 }
 0x23f   :  { %v817_v21 = vmax.f32 %v815_v19, %v816_v20 }
 0x241   :  { %v818_v22 = vrot.slane %v817_v21, 1 }
 0x243   :  { %v819_v23 = vmax.f32 %v817_v21, %v818_v22 }
 0x245   :  { %v820_v24 = vsub.f32 %v811_v9, %v819_v23 }
 0x247   :  { %v821_v25 = vmul.f32 1.442695, %v820_v24 }
 0x249   :  { %1465 = vpow2.f32 %v821_v25 }
 0x256   :  { %v1466_v26 = vpop.eup %1465 }
 0x257   :  { %v823_v27 = vsel %vm812_vm5, %v1466_v26, 0.0 }
 0x258   :  { %v824_v28 = vrot.slane %v823_v27, 4 }
 0x25a   :  { %v825_v29 = vadd.f32 %v824_v28, %v823_v27 }
 0x25c   :  { %v826_v30 = vrot.slane %v825_v29, 2 }
 0x25e   :  { %v827_v31 = vadd.f32 %v826_v30, %v825_v29 }
 0x260   :  { %v828_v32 = vrot.slane %v827_v31, 1 }
 0x262   :  { %v829_v33 = vadd.f32 %v828_v32, %v827_v31 }
 0x264   :  { %1467 = vrcp.f32 %v829_v33 }
 0x271   :  { %v1468_v34 = vpop.eup %1467 }
 0x272   :  { %v831_v35 = vmul.f32 %v1468_v34, %v1466_v26  ;;  %v1010_v34 = vld [vmem:[%s1789_s6] sm:$0x1] }
 0x274   :  { %832 = vxpose.xlu1.b32.start.end [1/1] (short) (narrow) %v831_v35, 8 }
 0x292   :  { %1015 = vrot.lane.b32.xlu1 %v785_v2, %s1474_s3 }
 0x2f0   :  { %v848_v37 = vpop.trf.xlu1 }
 0x2f1   :  { %1368 = vmatmul.mubr.msk.f32.vlgmr.msra.gmra.mxu1 %vm864_vm6, %v848_v37 }
 0x304   :  { %v1016_v39 = vpop.permute.xlu1 %1015 }
 0x305   :  { %v1018_v41 = vadd.f32 %v1016_v39, %v1014_v40 }
 0x307   :  { %v1026_v43 = vadd.f32 %v1024_v42, %v1018_v41 }
 0x309   :  { %v1027_v44 = vadd.f32 %v1280_v13, %v1026_v43 }
 0x30b   :  { %v1028_v45 = vmax.f32 %v1027_v44, 0.0 }
 0x30d   :  { %v1029_v46 = vsel %vm812_vm5, %v1028_v45, -inf }
 0x30e   :  { %v1030_v47 = vrot.slane %v1029_v46, 4 }
 0x310   :  { %v1031_v48 = vmax.f32 %v1029_v46, %v1030_v47 }
 0x312   :  { %v1032_v49 = vrot.slane %v1031_v48, 2 }
 0x314   :  { %v1033_v50 = vmax.f32 %v1031_v48, %v1032_v49 }
 0x316   :  { %v1034_v51 = vrot.slane %v1033_v50, 1 }
 0x318   :  { %v1035_v52 = vmax.f32 %v1033_v50, %v1034_v51 }
 0x31a   :  { %v1036_v53 = vsub.f32 %v1028_v45, %v1035_v52 }
 0x31c   :  { %v1037_v54 = vmul.f32 1.442695, %v1036_v53 }
 0x31e   :  { %1469 = vpow2.f32 %v1037_v54 }
 0x32b   :  { %v1470_v55 = vpop.eup %1469 }
 0x32c   :  { %v1039_v56 = vsel %vm812_vm5, %v1470_v55, 0.0 }
 0x32d   :  { %v1040_v57 = vrot.slane %v1039_v56, 4 }
 0x32f   :  { %v1041_v58 = vadd.f32 %v1040_v57, %v1039_v56 }
 0x331   :  { %v1042_v59 = vrot.slane %v1041_v58, 2 }
 0x333   :  { %v1043_v61 = vadd.f32 %v1042_v59, %v1041_v58 }
 0x335   :  { %v1044_v62 = vrot.slane %v1043_v61, 1 }
 0x337   :  { %v1045_v63 = vadd.f32 %v1044_v62, %v1043_v61 }
 0x339   :  { %1471 = vrcp.f32 %v1045_v63 }
 0x346   :  { %v1472_v0 = vpop.eup %1471 }
 0x347   :  { %v1047_v1 = vmul.f32 %v1472_v0, %v1470_v55 }
 0x349   :  { %1048 = vxpose.xlu0.b32.start.end [1/1] (short) (narrow) %v1047_v1, 8 }
 0x3b1   :  { %v937_v2 = vpop.f32.mrf.mxu1 }
 0x3b2   :  { %v941_v3 = vpack.c.bf16 %v937_v2, %v937_v2 }
 0x3b3   :  { %v1369_v4 = vpop.f32.mrf.mxu1 }
 0x3b4   :  { %1375 = vmatmul.mubr.msk.bf16.vlgmr.msra.gmra.mxu0 %vm141_vm0, %v941_v3 }
 0x3b5   :  { %1379 = vmatpush3.msk.msra.mxu0 %vm868_vm2, %v1555_v10  ;;  %1380 = vmatprep.mubr.msk.f32.mxu0 %vm1477_vm3, %v1476_v6 }
 0x3b6   :  { %1383 = vmatprep.subr.bf16.mxu0 %v1476_v6 }
 0x3c5   :  { %v1064_v5 = vpop.trf.xlu0 }
 0x3c6   :  { %1381 = vmatmul.mubr.msk.f32.vlgmr.msra.gmra.mxu0 %vm864_vm6, %v1064_v5 }
 0x3c7   :  { %1384 = vmatpush3.bf16.msra.mxu0 %v1463_v36  ;;  %1387 = vmatprep.mubr.msk.bf16.mxu0 %vm1477_vm3, %v1476_v6 }
 0x3c8   :  { %1385 = vmatprep.subr.bf16.mxu0 %v1476_v6 }
 0x3cb   :  { %1386 = vmatpush3.bf16.msra.mxu0 %v1464_v60 }
 0x474   :  { %v995_v7 = vpop.f32.mrf.mxu0 }
 0x475   :  { %v1002_v16 = vmul.f32 %v1001_v15, %v995_v7 }
 0x476   :  { %v1376_v8 = vpop.f32.mrf.mxu0 }
 0x477   :  { %v1003_v9 = vsel %vm796_vm1, %v1002_v16, 0.0 }
 0x478   :  { %v998_v11 = vpop.f32.mrf.mxu0  ;;  %v1004_v17 = vrot.slane %v1003_v9, 4 }
 0x47a   :  { %v1377_v12 = vpop.f32.mrf.mxu0  ;;  %v1005_v18 = vadd.f32 %v1004_v17, %v1003_v9 }
 0x47c   :  { %v1006_v20 = vrot.slane %v1005_v18, 2 }
 0x47e   :  { %v1007_v25 = vadd.f32 %v1006_v20, %v1005_v18 }
 0x480   :  { %v1008_v29 = vrot.slane %v1007_v25, 1 }
 0x482   :  { %v1009_v32 = vadd.f32 %v1008_v29, %v1007_v25 }
 0x484   :  { %v1011_v36 = vadd.f32 %v1010_v34, %v1009_v32 }
 0x486   :  { %v1151_v10 = vpop.f32.mrf.mxu0 }
 0x487   :  { %v1155_v13 = vpack.c.bf16 %v1151_v10, %v1151_v10 }
 0x488   :  { %v1382_v14 = vpop.f32.mrf.mxu0 }
 0x489   :  { %1388 = vmatmul.mubr.msk.bf16.vlgmr.msra.gmra.mxu0 %vm141_vm0, %v1155_v13 }
 0x549   :  { %v1193_v6 = vpop.f32.mrf.mxu0 }
 0x54a   :  { %v1199_v19 = vmul.f32 %v1193_v6, %v1001_v15 }
 0x54b   :  { %v1389_v21 = vpop.f32.mrf.mxu0 }
 0x54c   :  { %v1200_v22 = vsel %vm796_vm1, %v1199_v19, 0.0 }
 0x54d   :  { %v1201_v23 = vrot.slane %v1200_v22, 4  ;;  %v1196_v24 = vpop.f32.mrf.mxu0 }
 0x54f   :  { %v1202_v26 = vadd.f32 %v1201_v23, %v1200_v22  ;;  %v1390_v27 = vpop.f32.mrf.mxu0 }
 0x551   :  { %v1203_v28 = vrot.slane %v1202_v26, 2 }
 0x553   :  { %v1204_v30 = vadd.f32 %v1203_v28, %v1202_v26 }
 0x555   :  { %v1205_v31 = vrot.slane %v1204_v30, 1 }
 0x557   :  { %v1206_v33 = vadd.f32 %v1205_v31, %v1204_v30 }
 0x559   :  { %v1207_v35 = vadd.f32 %v1206_v33, %v1010_v34 }
 0x55b   :  { %v1209_v37 = vrot.slane %v1207_v35, 7 }
 0x55d   :  { %v1211_v38 = vsel %vm788_vm4, %v1011_v36, %v1209_v37 }
 0x55e   :  { %1212 = vst [vmem:[%s1790_s8] sm:$0x3] %v1211_v38 }

</bundles_post_ra>
